<compile_context>
chip_gen: v6e
topology: v6e:2x2x1
jax: 0.10.0
libtpu: 0.0.40
codegen_flags: <defaults>
</compile_context>

<pallas_src>
import functools

import jax
import jax.numpy as jnp
import numpy as np
from jax.experimental import pallas as pl
from jax.experimental.pallas import tpu as pltpu

_LANE = 128


def _moving_avg_matmul_kernel(x_ref, w_ref, o_ref, *, inv_k):
    """out block = (x block @ W block) * 1/k, f32 accumulation on the MXU."""
    acc = jnp.dot(
        x_ref[...],
        w_ref[...],
        preferred_element_type=jnp.float32,
        precision=jax.lax.Precision.HIGHEST,
    )
    o_ref[...] = (acc * inv_k).astype(o_ref.dtype)


def _build_weight_matrix(L, C, k, stride, pad, l_out, dtype):
    """Banded averaging matrix W: (L*C, l_out*C) of integer tap counts.

    out[b, t*C + c] = sum_l x[b, l*C + c] * W[l*C + c, t*C + c], with
    W[l*C + c, t*C + c] = #{ j in [0,k) : clamp(t*stride + j - pad, 0, L-1) == l }.
    Edge replication is folded in via the clamp; 1/k is applied in the kernel.
    """
    w_time = np.zeros((L, l_out), dtype=np.float32)
    for t in range(l_out):
        base = t * stride - pad
        for j in range(k):
            src = min(max(base + j, 0), L - 1)
            w_time[src, t] += 1.0
    # Block-diagonal-per-channel expansion: W[l*C+c, t*C+d] = w_time[l,t] * (c==d).
    w_flat = np.einsum("lt,cd->lctd", w_time, np.eye(C, dtype=np.float32))
    w_flat = w_flat.reshape(L * C, l_out * C)
    return jnp.asarray(w_flat, dtype=dtype)


def _round_up(x, m):
    return ((x + m - 1) // m) * m


def _sublane_multiple(dtype):
    # 32-bit -> 8, 16-bit -> 16, 8-bit -> 32 rows per layout tile.
    return max(8, 32 // jnp.dtype(dtype).itemsize)


def _vmem_caps():
    """(per-block working-set budget, vmem_limit_bytes) per TPU generation."""
    cap = 64 * 1024 * 1024  # conservative default: v7x physical VMEM per core
    try:
        info = pltpu.get_tpu_info()
        cap = int(getattr(info, "vmem_capacity_bytes", cap)) or cap
    except Exception:
        pass
    limit = min(cap * 3 // 4, 96 * 1024 * 1024)    # 96 MiB on v5e/v6e, 48 MiB on v7x
    budget = min(cap * 9 // 20, 64 * 1024 * 1024)  # ~57 MiB on v5e/v6e, ~28 MiB on v7x
    return budget, limit


def _pick_tiles(B, K, N, itemsize, sub, budget):
    """Pick (batch_tile, out_col_tile) against the layout-padded VMEM budget."""
    k_lanes = _round_up(K, _LANE)
    w_rows = _round_up(K, sub)

    def w_block_bytes(tn):
        return 2 * w_rows * _round_up(tn, _LANE) * itemsize  # double-buffered

    if w_block_bytes(N) <= budget // 2:
        tn = N                                   # whole W resident (common case)
    else:
        tn = _LANE
        for cand in (16 * _LANE, 8 * _LANE, 4 * _LANE, 2 * _LANE, _LANE):
            if cand < N and w_block_bytes(cand) <= budget // 2:
                tn = cand
                break

    rem = max(budget - w_block_bytes(tn), 0)
    # double-buffered input row (K lanes) + double-buffered output row (tn lanes)
    per_row = 2 * (k_lanes + _round_up(tn, _LANE)) * itemsize
    rows = int(rem // max(per_row, 1))

    if B <= sub:
        b_t = B                                   # block dim == full array dim
    else:
        b_t = max((rows // sub) * sub, sub)
        # Keep >= 2 batch grid steps: pipelining + both v7x TensorCores busy.
        b_t = min(b_t, _round_up(-(-B // 2), sub))
    return b_t, tn


def moving_avg_pallas(x, kernel_size, stride):
    """x: (B, L, C) -> (B, Lout, C); matches torch `moving_avg.forward`."""
    B, L, C = x.shape
    k = int(kernel_size)
    s = int(stride)
    pad = (k - 1) // 2
    Lp = L + 2 * pad
    l_out = (Lp - k) // s + 1
    assert l_out >= 1, "output length must be positive"

    K = L * C
    N = l_out * C
    itemsize = jnp.dtype(x.dtype).itemsize
    sub = _sublane_multiple(x.dtype)
    budget, vmem_limit = _vmem_caps()

    # TODO(synk): for very large L*C (e.g. traffic-scale channel counts) a single
    # (L*C, tn) weight block no longer fits VMEM; that regime needs a per-channel
    # (L, l_out) weight with a K-tiled accumulator instead of this dense banded W.
    b_t, tn = _pick_tiles(B, K, N, itemsize, sub, budget)
    grid = (pl.cdiv(B, b_t), pl.cdiv(N, tn))

    w = _build_weight_matrix(L, C, k, s, pad, l_out, x.dtype)
    x_flat = x.reshape(B, K)  # merge (L, C) -> lane-dense L*C; no transpose

    kernel = functools.partial(_moving_avg_matmul_kernel, inv_k=1.0 / k)
    out_flat = pl.pallas_call(
        kernel,
        out_shape=jax.ShapeDtypeStruct((B, N), x.dtype),
        grid=grid,
        in_specs=[
            pl.BlockSpec((b_t, K), lambda b, n: (b, 0)),
            pl.BlockSpec((K, tn), lambda b, n: (0, n)),  # constant along batch axis
        ],
        out_specs=pl.BlockSpec((b_t, tn), lambda b, n: (b, n)),
        compiler_params=pltpu.CompilerParams(
            dimension_semantics=("parallel", "arbitrary"),
            vmem_limit_bytes=vmem_limit,
        ),
    )(x_flat, w)
    return out_flat.reshape(B, l_out, C)


def _moving_avg_ref(x, kernel_size, stride):
    """Pure-JAX reference mirroring the PyTorch forward exactly."""
    pad = (kernel_size - 1) // 2
    front = jnp.repeat(x[:, 0:1, :], pad, axis=1)
    end = jnp.repeat(x[:, -1:, :], pad, axis=1)
    xp = jnp.concatenate([front, x, end], axis=1)
    Lp = xp.shape[1]
    l_out = (Lp - kernel_size) // stride + 1
    outs = [jnp.mean(xp[:, t * stride:t * stride + kernel_size, :], axis=1)
            for t in range(l_out)]
    return jnp.stack(outs, axis=1)


if __name__ == "__main__":
    key = jax.random.PRNGKey(0)
    # Small deterministic input: batch=16, seq_len=36, channels=8.
    x = jax.random.normal(key, (16, 36, 8), dtype=jnp.float32)

    # Tolerance leaves headroom for MXU multi-pass f32; structural errors
    # (wrong padding / stride / scale) are >= 1e-2 and still caught.
    tol = dict(atol=2e-3, rtol=2e-3)

    # DLinear configuration: kernel_size=25, stride=1.
    out = jax.block_until_ready(moving_avg_pallas(x, kernel_size=25, stride=1))
    ref = _moving_avg_ref(x, 25, 1)
    assert out.shape == ref.shape, (out.shape, ref.shape)
    assert jnp.allclose(out, ref, **tol), "mismatch (k=25, stride=1)"

    # Even kernel + stride>1 exercises the stride folded into W.
    out2 = jax.block_until_ready(moving_avg_pallas(x, kernel_size=4, stride=2))
    ref2 = _moving_avg_ref(x, 4, 2)
    assert out2.shape == ref2.shape, (out2.shape, ref2.shape)
    assert jnp.allclose(out2, ref2, **tol), "mismatch (k=4, stride=2)"

    print("KERNEL_OK")
</pallas_src>

<mosaic_0001>
module attributes {stable_mosaic.version = 11 : i64} {
  func.func @_moving_avg_matmul_kernel(%arg0: i32, %arg1: i32, %arg2: memref<8x288xf32, #tpu.memory_space<vmem>>, %arg3: memref<288x288xf32, #tpu.memory_space<vmem>>, %arg4: memref<8x288xf32, #tpu.memory_space<vmem>>) attributes {dimension_semantics = [#tpu.dimension_semantics<parallel>, #tpu.dimension_semantics<arbitrary>], iteration_bounds = array<i64: 2, 1>, scalar_prefetch = 0 : i64, scratch_operands = 0 : i64, tpu.core_type = #tpu.core_type<tc>, window_params = [{transform_indices = @transform_0, window_bounds = array<i64: 8, 288>}, {transform_indices = @transform_1, window_bounds = array<i64: 288, 288>}, {transform_indices = @transform_2, window_bounds = array<i64: 8, 288>}]} {
    %c0 = arith.constant 0 : index
    %c0_0 = arith.constant 0 : index
    %0 = vector.load %arg2[%c0, %c0_0] : memref<8x288xf32, #tpu.memory_space<vmem>>, vector<8x288xf32>
    %c0_1 = arith.constant 0 : index
    %c0_2 = arith.constant 0 : index
    %1 = vector.load %arg3[%c0_1, %c0_2] : memref<288x288xf32, #tpu.memory_space<vmem>>, vector<288x288xf32>
    %cst = arith.constant dense<0.000000e+00> : vector<8x288xf32>
    %2 = tpu.matmul %0, %1, %cst {dimension_numbers = #tpu.dot_dimension_numbers<[1], [0], [0], [1], [0, 0, 1, 1], [], []>, precision = #tpu.contract_precision<fp32>} : vector<8x288xf32>, vector<288x288xf32>, vector<8x288xf32> -> vector<8x288xf32>
    %cst_3 = arith.constant 4.000000e-02 : f32
    %3 = vector.broadcast %cst_3 : f32 to vector<8x288xf32>
    %4 = arith.mulf %2, %3 : vector<8x288xf32>
    %c0_4 = arith.constant 0 : index
    %c0_5 = arith.constant 0 : index
    %5 = vector.load %arg4[%c0_4, %c0_5] : memref<8x288xf32, #tpu.memory_space<vmem>>, vector<8x288xf32>
    tpu.vector_store %arg4[%c0_4, %c0_5], %4 {strides = array<i32>} : memref<8x288xf32, #tpu.memory_space<vmem>>, vector<8x288xf32>,
    return
  }
  func.func @transform_0(%arg0: i32, %arg1: i32) -> (i32, i32) {
    %c0_i32 = arith.constant 0 : i32
    %c0_i32_0 = arith.constant 0 : i32
    return %arg0, %c0_i32 : i32, i32
  }
  func.func @transform_1(%arg0: i32, %arg1: i32) -> (i32, i32) {
    %c0_i32 = arith.constant 0 : i32
    %c0_i32_0 = arith.constant 0 : i32
    return %c0_i32, %arg1 : i32, i32
  }
  func.func @transform_2(%arg0: i32, %arg1: i32) -> (i32, i32) {
    %c0_i32 = arith.constant 0 : i32
    return %arg0, %arg1 : i32, i32
  }
}

</mosaic_0001>

<bundles_post_ra>
// kernel: tpu_custom_call.1
= control target key start
LH: loop header
LB: loop body
LE: loop exit
PB: predicated region body
PF: predicated region fallthrough
CT: control target
= control target key end

     0   :  { %7 = vsyncpa [#allocation3], 0  ;;  %s6329_s0 = inlined_call_operand.hbm [shape: f32[16,288], index: 0, kind: input, shape index: {}]   ;;  %s6330_s1 = inlined_call_operand.hbm [shape: f32[288,288], index: 1, kind: input, shape index: {}]   ;;  %s6331_s2 = inlined_call_operand.hbm [shape: f32[16,288], index: 2, kind: output, shape index: {}]  }
   0x1   :  { %9 = vsyncpa [#allocation3 + $0x1], 0 }
   0x2   :  { %10 = vsyncpa [#allocation6], 0 }
   0x3   :  { %11 = vsyncpa [#allocation4], 0 }
   0x4   :  { %13 = vsyncpa [#allocation4 + $0x1], 0  ;;  %s4164_s9 = smov 0   ;;  %s4166_s10 = smov 0  }
   0x5   :  { %s4168_s11 = smov 0   ;;  %s4170_s12 = smov 0  }
   0x6   :  { %s4172_s13 = smov 0   ;;  %s4174_s14 = smov 0  }
   0x7 LB: > { %s3604_s15 = sadd.s32 4294967295, %s4140_s14   ;;  %s3605_s16 = sadd.s32 4294967294, %s4140_s14   ;;  %s4140_s14 = sphi %s4174_s14, %s19_s14   ;;  %s4136_s13 = sphi %s4172_s13, %s7091_s13   ;;  %s4132_s12 = sphi %s4170_s12, %s7090_s12   ;;  %s4128_s11 = sphi %s4168_s11, %s7089_s11   ;;  %s4124_s10 = sphi %s4166_s10, %s7088_s10   ;;  %s4120_s9 = sphi %s4164_s9, %s7087_s9  }
   0x8   : > { %p51_p0 = scmp.ne.s32.totalorder %s4124_s10, %s4120_s9  ;;  %p4198_p1 = scmp.eq.s32.totalorder %s3604_s15, 0 }
   0x9   : > { %p4202_p2 = scmp.eq.s32.totalorder %s3604_s15, 1  ;;  %p109_p3 = scmp.eq.s32.totalorder %s3605_s16, 1 }
   0xa   : > { %p4208_p4 = por %p4198_p1, %p51_p0  ;;  %p3606_p5 = scmp.ge.s32.totalorder %s4140_s14, 1 }
   0xb   : > { %p4213_p6 = por %p109_p3, %p51_p0  ;;  %p116_p7 = scmp.lt.s32.totalorder %s4140_s14, 3 }
   0xc   : > { %s6615_s19 = scalar_select %p4208_p4, 1, 0 }
   0xd   : > { %s6616_s20 = scalar_select %p4213_p6, 1, 0 }
   0xe   : > { %p4218_p8 = pnand %p3606_p5, %p116_p7  ;;  %s4142_s22 = smov [#allocation5]  }
   0xf   : > { %s131_s23 = sshll.u32 %s4142_s22, 4  ;;  %p3608_p10 = scmp.ge.s32.totalorder %s4140_s14, 2  ;;  %s132_s23 = int_to_ptr.vmem [resolvable:$true] %s131_s23 }
  0x10   : > { %p3933_p9 = pneg %p4218_p8  ;;  %s31_s25 = sadd.s32 1, %s4136_s13 }
  0x11   : > { %s4013_s26 = scalar_lea.vmem %s132_s23, 13824  ;;  %p4021_p5 = scmp.lt.s32.totalorder %s132_s23, %s132_s23 }
  0x12   : > { %p4227_p11 = pnand %p3933_p9, %p4198_p1  ;;  %p4014_p13 = scmp.ne.s32.totalorder %s132_s23, %s4013_s26 }
  0x13   : > { %p4022_p7 = scmp.lt.s32.totalorder %s4013_s26, %s4013_s26 }
  0x14   : > { %p4004_p12 = pneg %p4227_p11 }
  0x15   : > { %p4023_p6 = por %p4022_p7, %p4021_p5 }
  0x16   : > { %p4016_p0 = pnand %p4014_p13, %p4004_p12 }
  0x18   : > { %p4017_p3 = pneg %p4016_p0 }
  0x1a   : > { %p4024_p4 = pnand %p4023_p6, %p4017_p3 }
  0x1c   : > { %4027 = shalt.err (!%p4024_p4)
}
  0x1d   : > { %s4143_s27 = smov 384   ;;  %s4144_s28 = smov 24  }
  0x1e   : > { %3936 = dma.hbm_to_vmem [thread:$0]  (!%p4227_p11), %s6330_s1, 13824, %s132_s23, [#allocation6], %s4143_s27, %s4143_s27, %s4144_s28  }
  0x1f   : > { %p33_p6 = scmp.ge.s32.totalorder %s31_s25, 2  ;;  %s38_s3 = sadd.s32 1, %s4128_s11 }
  0x20   : > { %p45_p4 = scmp.ne.s32.totalorder %s4128_s11, %s4124_s10  ;;  %p46_p9 = scmp.eq.s32.totalorder %s4140_s14, 0 }
  0x21   : > { %s7093_s25 = smov (%p33_p6, %s31_s25), 0  ;;  %p3946_p0 = scmp.lt.s32.totalorder %s4140_s14, 2 }
  0x22   : > { %p47_p12 = por %p46_p9, %p45_p4  ;;  %p4247_p13 = por %p4202_p2, %p45_p4 }
  0x23   : > { %s35_s5 = ssub.s32 %s4136_s13, %s7093_s25  ;;  %s145_s6 = sand.u32 1, %s4128_s11  }
  0x24   : > { %p36_p3 = scmp.eq.s32.totalorder %s35_s5, 0  ;;  %s3921_s7 = smul.u32 24, %s145_s6 }
  0x25   : > { %s3922_s15 = smul.u32 384, %s4136_s13  ;;  %p4259_p11 = pnand %p3946_p0, %p47_p12 }
  0x26   : > { %s4256_s8 = scalar_select %p36_p3, %s4128_s11, %s38_s3  }
  0x27   : > { %s149_s16 = scalar_lea.vmem [#allocation2], %s3921_s7  ;;  %s155_s26 = scalar_lea.hbm %s6329_s0, %s3922_s15 }
  0x28   : > { %s157_s22 = sshll.u32 %s149_s16, 4  ;;  %s146_s27 = scalar_lea.sflag [#allocation3], %s145_s6  ;;  %s158_s22 = int_to_ptr.vmem [resolvable:$true] %s157_s22 }
  0x29   : > { %p4030_p2 = pneg %p4259_p11  ;;  %s4041_s28 = scalar_lea.vmem %s158_s22, 384 }
  0x2a   : > { %p4042_p5 = scmp.ne.s32.totalorder %s158_s22, %s4041_s28  ;;  %s4145_s29 = smov [#allocation2]  }
  0x2b   : > { %s4046_s30 = sshll.u32 %s4145_s29, 4  ;;  %s4047_s30 = int_to_ptr.vmem [resolvable:$false] %s4046_s30 }
  0x2c   : > { %p4044_p7 = pnand %p4042_p5, %p4030_p2  ;;  %s4048_s3 = scalar_lea.vmem %s4047_s30, 768 }
  0x2d   : > { %p4049_p4 = scmp.lt.s32.totalorder %s158_s22, %s4047_s30  ;;  %p4050_p9 = scmp.lt.s32.totalorder %s4048_s3, %s4041_s28 }
  0x2e   : > { %p4045_p6 = pneg %p4044_p7 }
  0x2f   : > { %p4051_p12 = por %p4050_p9, %p4049_p4 }
  0x31   : > { %p4052_p0 = pnand %p4051_p12, %p4045_p6 }
  0x33   : > { %4055 = shalt.err (!%p4052_p0)
}
  0x34   : > { %3940 = dma.hbm_to_vmem [thread:$0]  (!%p4259_p11), %s155_s26, 384, %s158_s22, %s146_s27  }
  0x35   : > { %166 = sbr.rel (%p4218_p8) target bundleno = 662 (0x296), region = 28 }
  0x3a   : > { %s4273_s5 = sand.u32 1, %s4124_s10   ;;  %p6621_p3 = scmp.ne.s32.totalorder %s6615_s19, 0 }
  0x3b   : > { %s3923_s6 = smul.u32 24, %s4273_s5  ;;  %s169_s7 = scalar_lea.sflag [#allocation3], %s4273_s5 }
  0x3d   : > { %s4279_s15 = scalar_lea.vmem [#allocation2], %s3923_s6 }
  0x3e   : > { %4107 = dma.done.wait (%p6621_p3), %s169_s7, 384  }
  0x3f   : > { %4109 = vsyncadd (%p6621_p3), %s169_s7, 4294966912 }
  0x40   : > { %4111 = dma.done.wait (%p4198_p1), [#allocation6], 13824  }
  0x41   : > { %4113 = vsyncadd (%p4198_p1), [#allocation6], 4294953472  ;;  %v248_v0 = vld [vmem:[#allocation5 + $0x170] sm:$0xff]  ;;  %v247_v1 = vld [vmem:[#allocation5 + $0x168] sm:$0xff]  ;;  %vm310_vm0 = vcmask 261120   ;;  %vm4147_vm1 = vmmov 0  }
  0x42   : > { %v245_v2 = vld [vmem:[#allocation5 + $0x158] sm:$0xff]  ;;  %v4289_v3 = vand.u32 4294901760, %v248_v0  ;;  %v4291_v4 = vand.u32 4294901760, %v247_v1  ;;  %v244_v6 = vld [vmem:[#allocation5 + $0x150] sm:$0xff]  ;;  %v242_v7 = vld [vmem:[#allocation5 + $0x140] sm:$0xff]  ;;  %s6282_s17 = scalar_lea.vmem [#allocation7], %s3923_s6 }
  0x43   : > { %v4293_v5 = vand.u32 4294901760, %v245_v2  ;;  %v241_v8 = vld [vmem:[#allocation5 + $0x138] sm:$0xff]  ;;  %v4295_v9 = vand.u32 4294901760, %v244_v6  ;;  %v4297_v10 = vand.u32 4294901760, %v242_v7  ;;  %v239_v12 = vld [vmem:[#allocation5 + $0x128] sm:$0xff]  ;;  %v238_v13 = vld [vmem:[#allocation5 + $0x120] sm:$0xff] }
  0x44   : > { %v4299_v11 = vand.u32 4294901760, %v241_v8  ;;  %v236_v14 = vld [vmem:[#allocation5 + $0x110] sm:$0xff]  ;;  %315 = vmatprep.subr.mxu0 %v4289_v3  ;;  %v4302_v15 = vand.u32 4294901760, %v239_v12  ;;  %v4304_v16 = vand.u32 4294901760, %v238_v13  ;;  %v4309_v18 = vsub.f32 %v248_v0, %v4289_v3  ;;  %v4311_v19 = vld [vmem:[#allocation5 + $0x108] sm:$0xff]  ;;  %v4313_v20 = vld [vmem:[#allocation5 + $0xf8] sm:$0xff] }
  0x45   : > { %v4306_v17 = vand.u32 4294901760, %v236_v14  ;;  %v4315_v21 = vld [vmem:[#allocation5 + $0xf0] sm:$0xff]  ;;  %317 = vmatpush1.msra.mxu0 %v4291_v4  ;;  %v4319_v22 = vand.u32 4294901760, %v4311_v19  ;;  %v4322_v23 = vsub.f32 %v247_v1, %v4291_v4  ;;  %v4325_v24 = vand.u32 4294901760, %v4313_v20  ;;  %v4330_v26 = vld [vmem:[#allocation5 + $0xe0] sm:$0xff]  ;;  %v4332_v27 = vld [vmem:[#allocation5 + $0xd8] sm:$0xff] }
  0x46   : > { %v4328_v25 = vsub.f32 %v245_v2, %v4293_v5  ;;  %v4334_v28 = vld [vmem:[#allocation5 + $0xc8] sm:$0xff]  ;;  %319 = vmatprep.subr.mxu0 %v4293_v5  ;;  %v6346_v29 = vand.u32 4294901760, %v4309_v18  ;;  %v4339_v30 = vand.u32 4294901760, %v4315_v21  ;;  %v4342_v31 = vsub.f32 %v244_v6, %v4295_v9  ;;  %v4356_v37 = vld [vmem:[#allocation5 + $0xc0] sm:$0xff]  ;;  %v4380_v46 = vld [vmem:[#allocation5 + $0xb0] sm:$0xff]  ;;  %s3924_s19 = smul.u32 384, %s4132_s12 }
  0x47   : > { %6622 = vst [vmem:[#allocation11_spill] sm:$0xff] %v4325_v24  ;;  %v4345_v32 = vand.u32 4294901760, %v4330_v26  ;;  %321 = vmatpush1.msra.mxu0 %v4295_v9  ;;  %v6344_v33 = vand.u32 4294901760, %v4322_v23  ;;  %v4351_v35 = vsub.f32 %v242_v7, %v4297_v10  ;;  %v4354_v36 = vand.u32 4294901760, %v4332_v27  ;;  %v4390_v51 = vld [vmem:[#allocation5 + $0xa8] sm:$0xff]  ;;  %v4397_v56 = vld [vmem:[#allocation5 + $0x98] sm:$0xff] }
  0x48   : > { %6623 = vst [vmem:[#allocation12_spill] sm:$0xff] %v4339_v30  ;;  %v6343_v34 = vand.u32 4294901760, %v4328_v25  ;;  %323 = vmatprep.subr.mxu0 %v4297_v10  ;;  %v462_v38 = vsub.f32 %v4309_v18, %v6346_v29  ;;  %v6341_v39 = vand.u32 4294901760, %v4342_v31  ;;  %v4364_v40 = vsub.f32 %v241_v8, %v4299_v11  ;;  %v4409_v61 = vld [vmem:[#allocation5 + $0x90] sm:$0xff]  ;;  %v4421_v2 = vld [vmem:[#allocation5 + $0x80] sm:$0xff]  ;;  %s3511_s21 = sshll.u32 %s6282_s17, 4  ;;  %s3509_s23 = scalar_lea.hbm %s6331_s2, %s3924_s19  ;;  %s3512_s21 = int_to_ptr.vmem [resolvable:$true] %s3511_s21 }
  0x49   : > { %6624 = vst [vmem:[#allocation13_spill] sm:$0xff] %v4345_v32  ;;  %6625 = vst [vmem:[#allocation14_spill] sm:$0xff] %v4354_v36  ;;  %v4367_v41 = vand.u32 4294901760, %v4334_v28  ;;  %325 = vmatpush1.msra.mxu0 %v4299_v11  ;;  %v468_v42 = vsub.f32 %v4322_v23, %v6344_v33  ;;  %v6339_v44 = vand.u32 4294901760, %v4351_v35  ;;  %v4378_v45 = vsub.f32 %v239_v12, %v4302_v15  ;;  %s3495_s24 = scalar_lea.sflag [#allocation4], %s4273_s5  ;;  %s4056_s18 = scalar_lea.vmem %s3512_s21, 384 }
  0x4a   : > { %v474_v43 = vsub.f32 %v4328_v25, %v6343_v34  ;;  %327 = vmatprep.subr.mxu0 %v4302_v15  ;;  %v463_v47 = vand.u32 4294901760, %v462_v38  ;;  %v480_v48 = vsub.f32 %v4342_v31, %v6341_v39  ;;  %v6338_v49 = vand.u32 4294901760, %v4364_v40  ;;  %v4512_v39 = vld [vmem:[#allocation5 + $0x38] sm:$0xff]  ;;  %v4522_v34 = vld [vmem:[#allocation5 + $0x30] sm:$0xff]  ;;  %p4057_p1 = scmp.ne.s32.totalorder %s3512_s21, %s4056_s18  ;;  %s4148_s26 = smov [#allocation7]  }
  0x4b   : > { %6626 = vst [vmem:[#allocation15_spill] sm:$0xff] %v4367_v41  ;;  %v4388_v50 = vand.u32 4294901760, %v4356_v37  ;;  %329 = vmatpush1.msra.mxu0 %v4304_v16  ;;  %v469_v52 = vand.u32 4294901760, %v468_v42  ;;  %v486_v54 = vsub.f32 %v4351_v35, %v6339_v44  ;;  %v6336_v55 = vand.u32 4294901760, %v4378_v45  ;;  %s4060_s12 = sshll.u32 %s4148_s26, 4  ;;  %s4061_s12 = int_to_ptr.vmem [resolvable:$false] %s4060_s12 }
  0x4c   : > { %v475_v53 = vand.u32 4294901760, %v474_v43  ;;  %331 = vmatprep.subr.mxu0 %v4306_v17  ;;  %464 = vmatprep.subr.mxu1 %v463_v47  ;;  %v481_v57 = vand.u32 4294901760, %v480_v48  ;;  %v492_v58 = vsub.f32 %v4364_v40, %v6338_v49  ;;  %v4404_v59 = vsub.f32 %v238_v13, %v4304_v16  ;;  %v4432_v13 = vld [vmem:[#allocation5 + $0x78] sm:$0xff]  ;;  %v4499_v49 = vld [vmem:[#allocation5 + $0x48] sm:$0xff]  ;;  %p4058_p8 = pnand %p4057_p1, %p4247_p13  ;;  %s4062_s27 = scalar_lea.vmem %s4061_s12, 768 }
  0x4d   : > { %6627 = vst [vmem:[#allocation16_spill] sm:$0xff] %v4388_v50  ;;  %v4407_v60 = vand.u32 4294901760, %v4380_v46  ;;  %333 = vmatpush1.msra.mxu0 %v4319_v22  ;;  %470 = vmatpush1.msra.mxu1 %v469_v52  ;;  %v487_v62 = vand.u32 4294901760, %v486_v54  ;;  %v498_v63 = vsub.f32 %v4378_v45, %v6336_v55  ;;  %v4416_v0 = vsub.f32 %v236_v14, %v4306_v17  ;;  %p4063_p2 = scmp.lt.s32.totalorder %s3512_s21, %s4061_s12  ;;  %p4064_p5 = scmp.lt.s32.totalorder %s4062_s27, %s4056_s18 }
  0x4e   : > { %v4419_v1 = vand.u32 4294901760, %v4390_v51  ;;  %335 = vmatprep.subr.mxu0 %v4325_v24  ;;  %476 = vmatprep.subr.mxu1 %v475_v53  ;;  %v493_v6 = vand.u32 4294901760, %v492_v58  ;;  %v6334_v7 = vand.u32 4294901760, %v4404_v59  ;;  %v4427_v8 = vsub.f32 %v4311_v19, %v4319_v22  ;;  %p4059_p11 = pneg %p4058_p8 }
  0x4f   : > { %6628 = vst [vmem:[#allocation17_spill] sm:$0xff] %v4407_v60  ;;  %v4430_v12 = vand.u32 4294901760, %v4397_v56  ;;  %337 = vmatpush1.msra.mxu0 %v4339_v30  ;;  %482 = vmatpush1.msra.mxu1 %v481_v57  ;;  %v499_v14 = vand.u32 4294901760, %v498_v63  ;;  %v6333_v38 = vand.u32 4294901760, %v4416_v0  ;;  %v4438_v42 = vsub.f32 %v4313_v20, %v4325_v24  ;;  %v4455_v20 = vld [vmem:[#allocation5 + $0x68] sm:$0xff]  ;;  %p4065_p7 = por %p4064_p5, %p4063_p2 }
  0x50   : > { %6629 = vst [vmem:[#allocation18_spill] sm:$0xff] %v4419_v1  ;;  %v4441_v43 = vand.u32 4294901760, %v4409_v61  ;;  %339 = vmatprep.subr.mxu0 %v4345_v32  ;;  %488 = vmatprep.subr.mxu1 %v487_v62  ;;  %v504_v19 = vsub.f32 %v4404_v59, %v6334_v7  ;;  %v6335_v47 = vand.u32 4294901760, %v4427_v8  ;;  %v4450_v48 = vsub.f32 %v4315_v21, %v4339_v30 }
  0x51   : > { %6630 = vst [vmem:[#allocation19_spill] sm:$0xff] %v4430_v12  ;;  %v4453_v52 = vand.u32 4294901760, %v4421_v2  ;;  %341 = vmatpush1.msra.mxu0 %v4354_v36  ;;  %494 = vmatpush1.msra.mxu1 %v493_v6  ;;  %v510_v53 = vsub.f32 %v4416_v0, %v6333_v38  ;;  %v6337_v54 = vand.u32 4294901760, %v4438_v42  ;;  %v4464_v57 = vsub.f32 %v4330_v26, %v4345_v32  ;;  %v4478_v38 = vld [vmem:[#allocation5 + $0x60] sm:$0xff]  ;;  %p4066_p6 = pnand %p4065_p7, %p4059_p11 }
  0x52   : > { %6631 = vst [vmem:[#allocation20_spill] sm:$0xff] %v4441_v43  ;;  %v4467_v21 = vand.u32 4294901760, %v4432_v13  ;;  %343 = vmatprep.subr.mxu0 %v4367_v41  ;;  %500 = vmatprep.subr.mxu1 %v499_v14  ;;  %v505_v58 = vand.u32 4294901760, %v504_v19  ;;  %v516_v62 = vsub.f32 %v4427_v8, %v6335_v47  ;;  %v6340_v63 = vand.u32 4294901760, %v4450_v48  ;;  %v4488_v47 = vld [vmem:[#allocation5 + $0x50] sm:$0xff] }
  0x53   : > { %6632 = vst [vmem:[#allocation21_spill] sm:$0xff] %v4453_v52  ;;  %v4476_v6 = vsub.f32 %v4332_v27, %v4354_v36  ;;  %345 = vmatpush1.msra.mxu0 %v4388_v50  ;;  %v511_v26 = vand.u32 4294901760, %v510_v53  ;;  %v522_v14 = vsub.f32 %v4438_v42, %v6337_v54  ;;  %v6342_v19 = vand.u32 4294901760, %v4464_v57  ;;  %v4602_v36 = vld [vmem:[#allocation5 + $0x2f0] sm:$0xff] }
  0x54   : > { %6633 = vst [vmem:[#allocation22_spill] sm:$0xff] %v4467_v21  ;;  %v4486_v7 = vand.u32 4294901760, %v4455_v20  ;;  %506 = vmatpush1.msra.mxu1 %v505_v58  ;;  %347 = vmatprep.subr.mxu0 %v4407_v60  ;;  %v517_v27 = vand.u32 4294901760, %v516_v62  ;;  %v528_v55 = vsub.f32 %v4450_v48, %v6340_v63  ;;  %v4497_v54 = vsub.f32 %v4334_v28, %v4367_v41 }
  0x55   : > { %v6345_v53 = vand.u32 4294901760, %v4476_v6  ;;  %512 = vmatprep.subr.mxu1 %v511_v26  ;;  %349 = vmatpush1.msra.mxu0 %v4419_v1  ;;  %v523_v44 = vand.u32 4294901760, %v522_v14  ;;  %v534_v58 = vsub.f32 %v4464_v57, %v6342_v19  ;;  %v4506_v62 = vand.u32 4294901760, %v4478_v38 }
  0x56   : > { %6634 = vst [vmem:[#allocation23_spill] sm:$0xff] %v4486_v7  ;;  %v4510_v63 = vsub.f32 %v4356_v37, %v4388_v50  ;;  %518 = vmatpush1.msra.mxu1 %v517_v27  ;;  %351 = vmatprep.subr.mxu0 %v4430_v12  ;;  %v529_v28 = vand.u32 4294901760, %v528_v55  ;;  %v6349_v14 = vand.u32 4294901760, %v4497_v54  ;;  %v4520_v19 = vand.u32 4294901760, %v4488_v47 }
  0x57   : > { %6635 = vst [vmem:[#allocation24_spill] sm:$0xff] %v4506_v62  ;;  %v540_v26 = vsub.f32 %v4476_v6, %v6345_v53  ;;  %524 = vmatprep.subr.mxu1 %v523_v44  ;;  %353 = vmatpush1.msra.mxu0 %v4441_v43  ;;  %v535_v37 = vand.u32 4294901760, %v534_v58  ;;  %v4528_v55 = vsub.f32 %v4380_v46, %v4407_v60  ;;  %v4531_v33 = vand.u32 4294901760, %v4499_v49  ;;  %v4533_v53 = vld [vmem:[#allocation5 + $0x20] sm:$0xff] }
  0x58   : > { %6636 = vst [vmem:[#allocation25_spill] sm:$0xff] %v4520_v19  ;;  %v6352_v27 = vand.u32 4294901760, %v4510_v63  ;;  %530 = vmatpush1.msra.mxu1 %v529_v28  ;;  %355 = vmatprep.subr.mxu0 %v4453_v52  ;;  %v546_v44 = vsub.f32 %v4497_v54, %v6349_v14  ;;  %v4541_v58 = vsub.f32 %v4390_v51, %v4419_v1  ;;  %v4544_v46 = vand.u32 4294901760, %v4512_v39  ;;  %v4558_v51 = vld [vmem:[#allocation5 + $0x18] sm:$0xff] }
  0x59   : > { %6637 = vst [vmem:[#allocation26_spill] sm:$0xff] %v4531_v33  ;;  %v541_v29 = vand.u32 4294901760, %v540_v26  ;;  %536 = vmatprep.subr.mxu1 %v535_v37  ;;  %357 = vmatpush1.msra.mxu0 %v4467_v21  ;;  %v4553_v60 = vsub.f32 %v4397_v56, %v4430_v12  ;;  %v4556_v14 = vand.u32 4294901760, %v4522_v34  ;;  %v4567_v26 = vand.u32 4294901760, %v4533_v53  ;;  %v4569_v56 = vld [vmem:[#allocation5 + $0x8] sm:$0xff] }
  0x5a   : > { %6638 = vst [vmem:[#allocation27_spill] sm:$0xff] %v4544_v46  ;;  %v552_v28 = vsub.f32 %v4510_v63, %v6352_v27  ;;  %359 = vmatprep.subr.mxu0 %v4486_v7  ;;  %v547_v37 = vand.u32 4294901760, %v546_v44  ;;  %v4564_v27 = vsub.f32 %v4409_v61, %v4441_v43  ;;  %v6642_v50 = vand.u32 4294901760, %v4528_v55  ;;  %v4592_v44 = vld [vmem:[#allocation5] sm:$0xff] }
  0x5b   : > { %6639 = vst [vmem:[#allocation28_spill] sm:$0xff] %v4556_v14  ;;  %542 = vmatpush1.msra.mxu1 %v541_v29  ;;  %6641 = vst [vmem:[#allocation30_spill] sm:$0xff] %v4567_v26  ;;  %361 = vmatpush1.msra.mxu0 %v4506_v62  ;;  %v4578_v1 = vsub.f32 %v4421_v2, %v4453_v52  ;;  %v6644_v61 = vand.u32 4294901760, %v4541_v58  ;;  %v4600_v41 = vand.u32 4294901760, %v4569_v56  ;;  %v4620_v24 = vand.u32 4294901760, %v4592_v44 }
  0x5c   : > { %6640 = vst [vmem:[#allocation29_spill] sm:$0xff] %v4564_v27  ;;  %v553_v12 = vand.u32 4294901760, %v552_v28  ;;  %v558_v29 = vsub.f32 %v4528_v55, %v6642_v50  ;;  %548 = vmatprep.subr.mxu1 %v547_v37  ;;  %363 = vmatprep.subr.mxu0 %v4520_v19  ;;  %v4586_v28 = vand.u32 4294901760, %v4558_v51  ;;  %v4590_v50 = vsub.f32 %v4432_v13, %v4467_v21 }
  0x5d   : > { %6643 = vst [vmem:[#allocation31_spill] sm:$0xff] %v4578_v1  ;;  %v564_v43 = vsub.f32 %v4541_v58, %v6644_v61  ;;  %365 = vmatpush1.msra.mxu0 %v4531_v33  ;;  %v6647_v37 = vand.u32 4294901760, %v4553_v60  ;;  %6648 = vst [vmem:[#allocation34_spill] sm:$0xff] %v4600_v41  ;;  %v6649_v13 = vand.u32 4294901760, %v4564_v27  ;;  %v4611_v21 = vsub.f32 %v4455_v20, %v4486_v7 }
  0x5e   : > { %6645 = vst [vmem:[#allocation32_spill] sm:$0xff] %v4586_v28  ;;  %6646 = vst [vmem:[#allocation33_spill] sm:$0xff] %v4590_v50  ;;  %554 = vmatpush1.msra.mxu1 %v553_v12  ;;  %v559_v2 = vand.u32 4294901760, %v558_v29  ;;  %367 = vmatprep.subr.mxu0 %v4544_v46  ;;  %v4626_v29 = vld [vmem:[#allocation5 + $0x2d8] sm:$0xff] }
  0x5f   : > { %v570_v52 = vsub.f32 %v4553_v60, %v6647_v37  ;;  %v565_v32 = vand.u32 4294901760, %v564_v43  ;;  %v576_v12 = vsub.f32 %v4564_v27, %v6649_v13  ;;  %6650 = vst [vmem:[#allocation35_spill] sm:$0xff] %v4611_v21  ;;  %v4613_v37 = vld [vmem:[#allocation5 + $0x2e8] sm:$0xff]  ;;  %369 = vmatpush1.msra.mxu0 %v4556_v14  ;;  %v6651_v43 = vand.u32 4294901760, %v4578_v1  ;;  %6652 = vst [vmem:[#allocation36_spill] sm:$0xff] %v4620_v24 }
  0x60   : > { %560 = vmatprep.subr.mxu1 %v559_v2  ;;  %v4624_v13 = vsub.f32 %v4478_v38, %v4506_v62  ;;  %371 = vmatprep.subr.mxu0 %v4567_v26  ;;  %v4645_v62 = vand.u32 4294901760, %v4613_v37 }
  0x61   : > { %v571_v61 = vand.u32 4294901760, %v570_v52  ;;  %v582_v30 = vsub.f32 %v4578_v1, %v6651_v43  ;;  %566 = vmatpush1.msra.mxu1 %v565_v32  ;;  %v577_v20 = vand.u32 4294901760, %v576_v12  ;;  %v6654_v52 = vand.u32 4294901760, %v4590_v50  ;;  %v4636_v1 = vld [vmem:[#allocation5 + $0x2d0] sm:$0xff]  ;;  %373 = vmatpush1.msra.mxu0 %v4586_v28 }
  0x62   : > { %6653 = vst [vmem:[#allocation37_spill] sm:$0xff] %v4624_v13  ;;  %v4634_v43 = vand.u32 4294901760, %v4602_v36  ;;  %v4642_v12 = vsub.f32 %v4488_v47, %v4520_v19  ;;  %6657 = vst [vmem:[#allocation40_spill] sm:$0xff] %v4645_v62  ;;  %375 = vmatprep.subr.mxu0 %v4600_v41  ;;  %v4655_v32 = vsub.f32 %v4499_v49, %v4531_v33  ;;  %v4658_v47 = vand.u32 4294901760, %v4626_v29  ;;  %v4672_v49 = vld [vmem:[#allocation5 + $0x2b8] sm:$0xff] }
  0x63   : > { %v588_v2 = vsub.f32 %v4590_v50, %v6654_v52  ;;  %572 = vmatprep.subr.mxu1 %v571_v61  ;;  %v583_v38 = vand.u32 4294901760, %v582_v30  ;;  %v4647_v52 = vld [vmem:[#allocation5 + $0x2c0] sm:$0xff]  ;;  %v6658_v61 = vand.u32 4294901760, %v4611_v21  ;;  %377 = vmatpush1.msra.mxu0 %v4620_v24  ;;  %v6661_v19 = vand.u32 4294901760, %v4624_v13 }
  0x64   : > { %6655 = vst [vmem:[#allocation38_spill] sm:$0xff] %v4634_v43  ;;  %6656 = vst [vmem:[#allocation39_spill] sm:$0xff] %v4642_v12  ;;  %578 = vmatpush1.msra.mxu1 %v577_v20  ;;  %v4667_v50 = vsub.f32 %v4512_v39, %v4544_v46  ;;  %379 = vmatprep.subr.mxu0 %v4634_v43  ;;  %v4683_v39 = vld [vmem:[#allocation5 + $0x2a8] sm:$0xff] }
  0x65   : > { %v589_v7 = vand.u32 4294901760, %v588_v2  ;;  %v594_v30 = vsub.f32 %v4611_v21, %v6658_v61  ;;  %6659 = vst [vmem:[#allocation41_spill] sm:$0xff] %v4655_v32  ;;  %6660 = vst [vmem:[#allocation42_spill] sm:$0xff] %v4658_v47  ;;  %584 = vmatprep.subr.mxu1 %v583_v38  ;;  %v600_v20 = vsub.f32 %v4624_v13, %v6661_v19  ;;  %v4670_v61 = vand.u32 4294901760, %v4636_v1 }
  0x66   : > { %6662 = vst [vmem:[#allocation43_spill] sm:$0xff] %v4667_v50  ;;  %v6395_v38 = vand.u32 4294901760, %v4655_v32  ;;  %v4678_v19 = vsub.f32 %v4522_v34, %v4556_v14  ;;  %v4681_v2 = vand.u32 4294901760, %v4647_v52  ;;  %v6666_v13 = vand.u32 4294901760, %v4642_v12  ;;  %381 = vmatpush2.msra.mxu0 %v4645_v62 }
  0x67   : > { %6663 = vst [vmem:[#allocation44_spill] sm:$0xff] %v4670_v61  ;;  %590 = vmatpush1.msra.mxu1 %v589_v7  ;;  %v595_v33 = vand.u32 4294901760, %v594_v30  ;;  %v601_v46 = vand.u32 4294901760, %v600_v20  ;;  %v4692_v30 = vsub.f32 %v4533_v53, %v4567_v26  ;;  %383 = vmatprep.subr.mxu0 %v4658_v47  ;;  %v4700_v14 = vand.u32 4294901760, %v4672_v49  ;;  %v4706_v7 = vld [vmem:[#allocation5 + $0x2a0] sm:$0xff] }
  0x68   : > { %6664 = vst [vmem:[#allocation45_spill] sm:$0xff] %v4678_v19  ;;  %6665 = vst [vmem:[#allocation46_spill] sm:$0xff] %v4681_v2  ;;  %v606_v21 = vsub.f32 %v4642_v12, %v6666_v13  ;;  %v612_v34 = vsub.f32 %v4655_v32, %v6395_v38  ;;  %v4704_v13 = vsub.f32 %v4558_v51, %v4586_v28  ;;  %385 = vmatpush2.msra.mxu0 %v4670_v61  ;;  %v4716_v32 = vld [vmem:[#allocation5 + $0x290] sm:$0xff] }
  0x69   : > { %6667 = vst [vmem:[#allocation47_spill] sm:$0xff] %v4692_v30  ;;  %596 = vmatprep.subr.mxu1 %v595_v33  ;;  %6668 = vst [vmem:[#allocation48_spill] sm:$0xff] %v4700_v14  ;;  %v6670_v33 = vand.u32 4294901760, %v4667_v50  ;;  %v4714_v20 = vand.u32 4294901760, %v4683_v39  ;;  %v6672_v51 = vand.u32 4294901760, %v4678_v19  ;;  %387 = vmatprep.subr.mxu0 %v4681_v2 }
  0x6a   : > { %6669 = vst [vmem:[#allocation49_spill] sm:$0xff] %v4704_v13  ;;  %602 = vmatpush1.msra.mxu1 %v601_v46  ;;  %v607_v53 = vand.u32 4294901760, %v606_v21  ;;  %v613_v12 = vand.u32 4294901760, %v612_v34  ;;  %v4725_v46 = vsub.f32 %v4569_v56, %v4600_v41  ;;  %389 = vmatpush2.msra.mxu0 %v4700_v14  ;;  %v4738_v21 = vsub.f32 %v4592_v44, %v4620_v24  ;;  %v4761_v24 = vld [vmem:[#allocation5 + $0x260] sm:$0xff] }
  0x6b   : > { %v618_v26 = vsub.f32 %v4667_v50, %v6670_v33  ;;  %6671 = vst [vmem:[#allocation50_spill] sm:$0xff] %v4714_v20  ;;  %v624_v28 = vsub.f32 %v4678_v19, %v6672_v51  ;;  %v4727_v33 = vld [vmem:[#allocation5 + $0x288] sm:$0xff]  ;;  %v6674_v50 = vand.u32 4294901760, %v4692_v30  ;;  %v4734_v51 = vand.u32 4294901760, %v4706_v7  ;;  %v4740_v19 = vld [vmem:[#allocation5 + $0x278] sm:$0xff]  ;;  %391 = vmatprep.subr.mxu0 %v4714_v20 }
  0x6c   : > { %6673 = vst [vmem:[#allocation51_spill] sm:$0xff] %v4725_v46  ;;  %608 = vmatprep.subr.mxu1 %v607_v53  ;;  %6676 = vst [vmem:[#allocation53_spill] sm:$0xff] %v4738_v21  ;;  %v6677_v53 = vand.u32 4294901760, %v4704_v13  ;;  %v4748_v41 = vand.u32 4294901760, %v4716_v32 }
  0x6d   : > { %v619_v38 = vand.u32 4294901760, %v618_v26  ;;  %v630_v34 = vsub.f32 %v4692_v30, %v6674_v50  ;;  %6675 = vst [vmem:[#allocation52_spill] sm:$0xff] %v4734_v51  ;;  %614 = vmatpush1.msra.mxu1 %v613_v12  ;;  %v625_v56 = vand.u32 4294901760, %v624_v28  ;;  %v4750_v30 = vld [vmem:[#allocation5 + $0x270] sm:$0xff]  ;;  %393 = vmatpush2.msra.mxu0 %v4734_v51  ;;  %v6418_v12 = vand.u32 4294901760, %v4738_v21 }
  0x6e   : > { %v636_v26 = vsub.f32 %v4704_v13, %v6677_v53  ;;  %6678 = vst [vmem:[#allocation54_spill] sm:$0xff] %v4748_v41  ;;  %v4756_v28 = vsub.f32 %v4602_v36, %v4634_v43  ;;  %v4759_v53 = vand.u32 4294901760, %v4727_v33  ;;  %v6681_v13 = vand.u32 4294901760, %v4725_v46  ;;  %395 = vmatprep.subr.mxu0 %v4748_v41 }
  0x6f   : > { %620 = vmatprep.subr.mxu1 %v619_v38  ;;  %v631_v44 = vand.u32 4294901760, %v630_v34  ;;  %v4769_v34 = vsub.f32 %v4613_v37, %v4645_v62  ;;  %v4772_v36 = vand.u32 4294901760, %v4740_v19  ;;  %v648_v43 = vsub.f32 %v4738_v21, %v6418_v12  ;;  %v4786_v37 = vld [vmem:[#allocation5 + $0x258] sm:$0xff] }
  0x70   : > { %6679 = vst [vmem:[#allocation55_spill] sm:$0xff] %v4756_v28  ;;  %6680 = vst [vmem:[#allocation56_spill] sm:$0xff] %v4759_v53  ;;  %626 = vmatpush1.msra.mxu1 %v625_v56  ;;  %v637_v50 = vand.u32 4294901760, %v636_v26  ;;  %v642_v38 = vsub.f32 %v4725_v46, %v6681_v13  ;;  %397 = vmatpush2.msra.mxu0 %v4759_v53  ;;  %v4781_v13 = vsub.f32 %v4626_v29, %v4658_v47  ;;  %v4797_v29 = vld [vmem:[#allocation5 + $0x248] sm:$0xff] }
  0x71   : > { %6682 = vst [vmem:[#allocation57_spill] sm:$0xff] %v4769_v34  ;;  %6683 = vst [vmem:[#allocation58_spill] sm:$0xff] %v4772_v36  ;;  %632 = vmatprep.subr.mxu1 %v631_v44  ;;  %v4784_v26 = vand.u32 4294901760, %v4750_v30  ;;  %v6429_v44 = vand.u32 4294901760, %v4769_v34  ;;  %399 = vmatprep.subr.mxu0 %v4772_v36  ;;  %v4792_v12 = vsub.f32 %v4636_v1, %v4670_v61  ;;  %v4795_v56 = vand.u32 4294901760, %v4761_v24 }
  0x72   : > { %6684 = vst [vmem:[#allocation59_spill] sm:$0xff] %v4781_v13  ;;  %638 = vmatpush1.msra.mxu1 %v637_v50  ;;  %v643_v62 = vand.u32 4294901760, %v642_v38  ;;  %v649_v47 = vand.u32 4294901760, %v648_v43  ;;  %v6688_v21 = vand.u32 4294901760, %v4756_v28  ;;  %v4806_v38 = vsub.f32 %v4647_v52, %v4681_v2  ;;  %v4820_v50 = vld [vmem:[#allocation5 + $0x240] sm:$0xff] }
  0x73   : > { %6685 = vst [vmem:[#allocation60_spill] sm:$0xff] %v4784_v26  ;;  %6686 = vst [vmem:[#allocation61_spill] sm:$0xff] %v4792_v12  ;;  %401 = vmatpush2.msra.mxu0 %v4784_v26  ;;  %v660_v1 = vsub.f32 %v4769_v34, %v6429_v44  ;;  %v4814_v43 = vand.u32 4294901760, %v4786_v37  ;;  %v4827_v61 = vand.u32 4294901760, %v4797_v29  ;;  %v4829_v34 = vld [vmem:[#allocation5 + $0x230] sm:$0xff]  ;;  %v6694_v27 = vand.u32 4294901760, %v4792_v12 }
  0x74   : > { %6687 = vst [vmem:[#allocation62_spill] sm:$0xff] %v4795_v56  ;;  %v654_v46 = vsub.f32 %v4756_v28, %v6688_v21  ;;  %6689 = vst [vmem:[#allocation63_spill] sm:$0xff] %v4806_v38  ;;  %644 = vmatprep.subr.mxu1 %v643_v62  ;;  %403 = vmatprep.subr.mxu0 %v4795_v56  ;;  %v4818_v21 = vsub.f32 %v4672_v49, %v4700_v14  ;;  %v6692_v62 = vand.u32 4294901760, %v4781_v13 }
  0x75   : > { %6690 = vst [vmem:[#allocation64_spill] sm:$0xff] %v4814_v43  ;;  %650 = vmatpush1.msra.mxu1 %v649_v47  ;;  %6693 = vst [vmem:[#allocation66_spill] sm:$0xff] %v4827_v61  ;;  %v661_v28 = vand.u32 4294901760, %v660_v1  ;;  %v672_v49 = vsub.f32 %v4792_v12, %v6694_v27  ;;  %405 = vmatpush2.msra.mxu0 %v4814_v43  ;;  %v6696_v14 = vand.u32 4294901760, %v4806_v38  ;;  %v4847_v27 = vand.u32 4294901760, %v4820_v50  ;;  %v4853_v12 = vld [vmem:[#allocation5 + $0x218] sm:$0xff] }
  0x76   : > { %6691 = vst [vmem:[#allocation65_spill] sm:$0xff] %v4818_v21  ;;  %v655_v52 = vand.u32 4294901760, %v654_v46  ;;  %v666_v2 = vsub.f32 %v4781_v13, %v6692_v62  ;;  %v4838_v46 = vsub.f32 %v4683_v39, %v4714_v20  ;;  %v4840_v62 = vld [vmem:[#allocation5 + $0x228] sm:$0xff]  ;;  %407 = vmatprep.subr.mxu0 %v4827_v61  ;;  %v4851_v47 = vsub.f32 %v4706_v7, %v4734_v51 }
  0x77   : > { %v678_v1 = vsub.f32 %v4806_v38, %v6696_v14  ;;  %6697 = vst [vmem:[#allocation68_spill] sm:$0xff] %v4847_v27  ;;  %v673_v39 = vand.u32 4294901760, %v672_v49  ;;  %v4860_v14 = vand.u32 4294901760, %v4829_v34  ;;  %v4862_v38 = vld [vmem:[#allocation5 + $0x210] sm:$0xff]  ;;  %409 = vmatpush2.msra.mxu0 %v4847_v27  ;;  %v4871_v49 = vand.u32 4294901760, %v4840_v62 }
  0x78   : > { %6695 = vst [vmem:[#allocation67_spill] sm:$0xff] %v4838_v46  ;;  %656 = vmatprep.subr.mxu1 %v655_v52  ;;  %v667_v44 = vand.u32 4294901760, %v666_v2  ;;  %6698 = vst [vmem:[#allocation69_spill] sm:$0xff] %v4851_v47  ;;  %v6699_v52 = vand.u32 4294901760, %v4818_v21  ;;  %v6452_v7 = vand.u32 4294901760, %v4851_v47  ;;  %v6703_v51 = vand.u32 4294901760, %v4838_v46 }
  0x79   : > { %662 = vmatpush2.msra.mxu1 %v661_v28  ;;  %6700 = vst [vmem:[#allocation70_spill] sm:$0xff] %v4860_v14  ;;  %v679_v13 = vand.u32 4294901760, %v678_v1  ;;  %v4868_v28 = vsub.f32 %v4716_v32, %v4748_v41  ;;  %6702 = vst [vmem:[#allocation72_spill] sm:$0xff] %v4871_v49  ;;  %411 = vmatprep.subr.mxu0 %v4860_v14  ;;  %v4881_v1 = vsub.f32 %v4727_v33, %v4759_v53  ;;  %v4898_v33 = vld [vmem:[#allocation5 + $0x1f8] sm:$0xff] }
  0x7a   : > { %v684_v2 = vsub.f32 %v4818_v21, %v6699_v52  ;;  %668 = vmatprep.subr.mxu1 %v667_v44  ;;  %v4873_v52 = vld [vmem:[#allocation5 + $0x200] sm:$0xff]  ;;  %v690_v44 = vsub.f32 %v4838_v46, %v6703_v51  ;;  %v4884_v32 = vand.u32 4294901760, %v4853_v12  ;;  %v696_v41 = vsub.f32 %v4851_v47, %v6452_v7  ;;  %413 = vmatpush2.msra.mxu0 %v4871_v49 }
  0x7b   : > { %6701 = vst [vmem:[#allocation71_spill] sm:$0xff] %v4868_v28  ;;  %674 = vmatpush2.msra.mxu1 %v673_v39  ;;  %6704 = vst [vmem:[#allocation73_spill] sm:$0xff] %v4881_v1  ;;  %v4893_v51 = vsub.f32 %v4740_v19, %v4772_v36  ;;  %v4904_v7 = vsub.f32 %v4750_v30, %v4784_v26  ;;  %v4907_v39 = vand.u32 4294901760, %v4873_v52  ;;  %v4909_v19 = vld [vmem:[#allocation5 + $0x1e8] sm:$0xff]  ;;  %v6710_v47 = vand.u32 4294901760, %v4868_v28 }
  0x7c   : > { %v685_v20 = vand.u32 4294901760, %v684_v2  ;;  %6705 = vst [vmem:[#allocation74_spill] sm:$0xff] %v4884_v32  ;;  %680 = vmatprep.subr.mxu1 %v679_v13  ;;  %v4896_v2 = vand.u32 4294901760, %v4862_v38  ;;  %v691_v53 = vand.u32 4294901760, %v690_v44  ;;  %v6463_v13 = vand.u32 4294901760, %v4881_v1  ;;  %415 = vmatprep.subr.mxu0 %v4884_v32 }
  0x7d   : > { %6706 = vst [vmem:[#allocation75_spill] sm:$0xff] %v4893_v51  ;;  %6708 = vst [vmem:[#allocation77_spill] sm:$0xff] %v4904_v7  ;;  %v697_v36 = vand.u32 4294901760, %v696_v41  ;;  %v702_v46 = vsub.f32 %v4868_v28, %v6710_v47  ;;  %v4918_v44 = vsub.f32 %v4761_v24, %v4795_v56  ;;  %v4926_v41 = vand.u32 4294901760, %v4898_v33 }
  0x7e   : > { %6707 = vst [vmem:[#allocation76_spill] sm:$0xff] %v4896_v2  ;;  %686 = vmatpush2.msra.mxu1 %v685_v20  ;;  %6709 = vst [vmem:[#allocation78_spill] sm:$0xff] %v4907_v39  ;;  %417 = vmatpush2.msra.mxu0 %v4896_v2  ;;  %v708_v30 = vsub.f32 %v4881_v1, %v6463_v13  ;;  %v4930_v47 = vsub.f32 %v4786_v37, %v4814_v43  ;;  %v4932_v20 = vld [vmem:[#allocation5 + $0x1e0] sm:$0xff]  ;;  %v4939_v26 = vand.u32 4294901760, %v4909_v19  ;;  %v4941_v1 = vld [vmem:[#allocation5 + $0x1d0] sm:$0xff] }
  0x7f   : > { %6711 = vst [vmem:[#allocation79_spill] sm:$0xff] %v4918_v44  ;;  %692 = vmatprep.subr.mxu1 %v691_v53  ;;  %419 = vmatprep.subr.mxu0 %v4907_v39  ;;  %6712 = vst [vmem:[#allocation80_spill] sm:$0xff] %v4926_v41  ;;  %v703_v24 = vand.u32 4294901760, %v702_v46  ;;  %v6714_v53 = vand.u32 4294901760, %v4893_v51  ;;  %v6716_v21 = vand.u32 4294901760, %v4904_v7  ;;  %v4950_v46 = vsub.f32 %v4797_v29, %v4827_v61 }
  0x80   : > { %6713 = vst [vmem:[#allocation81_spill] sm:$0xff] %v4930_v47  ;;  %698 = vmatpush2.msra.mxu1 %v697_v36  ;;  %6715 = vst [vmem:[#allocation82_spill] sm:$0xff] %v4939_v26  ;;  %v709_v28 = vand.u32 4294901760, %v708_v30  ;;  %421 = vmatpush2.msra.mxu0 %v4926_v41  ;;  %v6718_v43 = vand.u32 4294901760, %v4918_v44  ;;  %v4963_v36 = vsub.f32 %v4820_v50, %v4847_v27 }
  0x81   : > { %v714_v56 = vsub.f32 %v4893_v51, %v6714_v53  ;;  %v720_v37 = vsub.f32 %v4904_v7, %v6716_v21  ;;  %6717 = vst [vmem:[#allocation83_spill] sm:$0xff] %v4950_v46  ;;  %v4952_v53 = vld [vmem:[#allocation5 + $0x1c8] sm:$0xff]  ;;  %704 = vmatprep.subr.mxu1 %v703_v24  ;;  %423 = vmatprep.subr.mxu0 %v4939_v26  ;;  %v4959_v21 = vand.u32 4294901760, %v4932_v20  ;;  %v4965_v7 = vld [vmem:[#allocation5 + $0x1b8] sm:$0xff]  ;;  %v6721_v24 = vand.u32 4294901760, %v4930_v47 }
  0x82   : > { %v726_v30 = vsub.f32 %v4918_v44, %v6718_v43  ;;  %6720 = vst [vmem:[#allocation85_spill] sm:$0xff] %v4963_v36  ;;  %710 = vmatpush2.msra.mxu1 %v709_v28  ;;  %v4972_v43 = vand.u32 4294901760, %v4941_v1  ;;  %v4974_v44 = vld [vmem:[#allocation5 + $0x1b0] sm:$0xff]  ;;  %v6486_v50 = vand.u32 4294901760, %v4963_v36  ;;  %v4980_v28 = vsub.f32 %v4829_v34, %v4860_v14 }
  0x83   : > { %v715_v13 = vand.u32 4294901760, %v714_v56  ;;  %6719 = vst [vmem:[#allocation84_spill] sm:$0xff] %v4959_v21  ;;  %v721_v29 = vand.u32 4294901760, %v720_v37  ;;  %v732_v56 = vsub.f32 %v4930_v47, %v6721_v24  ;;  %425 = vmatpush2.msra.mxu0 %v4959_v21  ;;  %v4983_v37 = vand.u32 4294901760, %v4952_v53  ;;  %v4985_v24 = vld [vmem:[#allocation5 + $0x1a0] sm:$0xff] }
  0x84   : > { %v727_v51 = vand.u32 4294901760, %v726_v30  ;;  %6722 = vst [vmem:[#allocation86_spill] sm:$0xff] %v4980_v28  ;;  %v6723_v27 = vand.u32 4294901760, %v4950_v46  ;;  %427 = vmatprep.subr.mxu0 %v4972_v43  ;;  %v4993_v30 = vsub.f32 %v4840_v62, %v4871_v49  ;;  %v4996_v34 = vand.u32 4294901760, %v4965_v7  ;;  %v5010_v62 = vld [vmem:[#allocation5 + $0x198] sm:$0xff] }
  0x85   : > { %716 = vmatprep.subr.mxu1 %v715_v13  ;;  %v733_v61 = vand.u32 4294901760, %v732_v56  ;;  %v744_v14 = vsub.f32 %v4963_v36, %v6486_v50  ;;  %429 = vmatpush2.msra.mxu0 %v4983_v37  ;;  %v5008_v56 = vand.u32 4294901760, %v4974_v44  ;;  %v5016_v50 = vsub.f32 %v4862_v38, %v4896_v2  ;;  %v5044_v2 = vld [vmem:[#allocation5 + $0x180] sm:$0xff] }
  0x86   : > { %722 = vmatpush2.msra.mxu1 %v721_v29  ;;  %v738_v13 = vsub.f32 %v4950_v46, %v6723_v27  ;;  %6724 = vst [vmem:[#allocation87_spill] sm:$0xff] %v4993_v30  ;;  %6725 = vst [vmem:[#allocation88_spill] sm:$0xff] %v4996_v34  ;;  %v5005_v27 = vsub.f32 %v4853_v12, %v4884_v32  ;;  %431 = vmatprep.subr.mxu0 %v4996_v34  ;;  %v5019_v29 = vand.u32 4294901760, %v4985_v24  ;;  %v5021_v12 = vld [vmem:[#allocation5 + $0x188] sm:$0xff] }
  0x87   : > { %728 = vmatprep.subr.mxu1 %v727_v51  ;;  %6727 = vst [vmem:[#allocation90_spill] sm:$0xff] %v5008_v56  ;;  %v6495_v51 = vand.u32 4294901760, %v4993_v30  ;;  %6728 = vst [vmem:[#allocation91_spill] sm:$0xff] %v5016_v50  ;;  %v745_v32 = vand.u32 4294901760, %v744_v14  ;;  %v6730_v36 = vand.u32 4294901760, %v4980_v28  ;;  %433 = vmatpush2.msra.mxu0 %v5008_v56  ;;  %v6734_v47 = vand.u32 4294901760, %v5016_v50 }
  0x88   : > { %6726 = vst [vmem:[#allocation89_spill] sm:$0xff] %v5005_v27  ;;  %734 = vmatpush2.msra.mxu1 %v733_v61  ;;  %v739_v49 = vand.u32 4294901760, %v738_v13  ;;  %6729 = vst [vmem:[#allocation92_spill] sm:$0xff] %v5019_v29  ;;  %v5030_v13 = vsub.f32 %v4873_v52, %v4907_v39  ;;  %435 = vmatprep.subr.mxu0 %v5019_v29  ;;  %v5042_v61 = vsub.f32 %v4898_v33, %v4926_v41 }
  0x89   : > { %v750_v46 = vsub.f32 %v4980_v28, %v6730_v36  ;;  %v756_v38 = vsub.f32 %v4993_v30, %v6495_v51  ;;  %v5038_v36 = vand.u32 4294901760, %v5010_v62  ;;  %v6733_v52 = vand.u32 4294901760, %v5005_v27  ;;  %v200_v30 = vld [vmem:[%s4279_s15 + $0x8] sm:$0xff] }
  0x8a   : > { %6731 = vst [vmem:[#allocation93_spill] sm:$0xff] %v5030_v13  ;;  %740 = vmatprep.subr.mxu1 %v739_v49  ;;  %6732 = vst [vmem:[#allocation94_spill] sm:$0xff] %v5042_v61  ;;  %v5051_v39 = vand.u32 4294901760, %v5021_v12  ;;  %v768_v33 = vsub.f32 %v5016_v50, %v6734_v47  ;;  %v6736_v41 = vand.u32 4294901760, %v5030_v13  ;;  %v5073_v47 = vsub.f32 %v4932_v20, %v4959_v21 }
  0x8b   : > { %746 = vmatpush2.msra.mxu1 %v745_v32  ;;  %v751_v49 = vand.u32 4294901760, %v750_v46  ;;  %v762_v51 = vsub.f32 %v5005_v27, %v6733_v52  ;;  %v757_v28 = vand.u32 4294901760, %v756_v38  ;;  %437 = vmatpush2.msra.mxu0 %v5038_v36  ;;  %v5061_v46 = vsub.f32 %v4909_v19, %v4939_v26  ;;  %v199_v52 = vld [vmem:[%s4279_s15] sm:$0xff] }
  0x8c   : > { %v774_v27 = vsub.f32 %v5030_v13, %v6736_v41  ;;  %439 = vmatprep.subr.mxu0 %v5051_v39  ;;  %v5069_v38 = vand.u32 4294901760, %v5044_v2  ;;  %6737 = vst [vmem:[#allocation96_spill] sm:$0xff] %v5073_v47  ;;  %v769_v32 = vand.u32 4294901760, %v768_v33  ;;  %v6738_v19 = vand.u32 4294901760, %v5042_v61 }
  0x8d   : > { %6735 = vst [vmem:[#allocation95_spill] sm:$0xff] %v5061_v46  ;;  %752 = vmatprep.subr.mxu1 %v751_v49  ;;  %v763_v14 = vand.u32 4294901760, %v762_v51  ;;  %v6515_v51 = vand.u32 4294901760, %v5061_v46  ;;  %v5079_v26 = vand.u32 4294901760, %v200_v30  ;;  %v6514_v13 = vand.u32 4294901760, %v5073_v47 }
  0x8e   : > { %758 = vmatpush2.msra.mxu1 %v757_v28  ;;  %v780_v49 = vsub.f32 %v5042_v61, %v6738_v19  ;;  %v775_v41 = vand.u32 4294901760, %v774_v27  ;;  %441 = vmatpush2.msra.mxu0 %v5069_v38  ;;  %v5085_v20 = vsub.f32 %v4941_v1, %v4972_v43  ;;  %v5087_v28 = vand.u32 4294901760, %v199_v52 }
  0x8f   : > { %6739 = vst [vmem:[#allocation97_spill] sm:$0xff] %v5079_v26  ;;  %764 = vmatprep.subr.mxu1 %v763_v14  ;;  %v786_v19 = vsub.f32 %v5061_v46, %v6515_v51  ;;  %v5093_v21 = vsub.f32 %v200_v30, %v5079_v26  ;;  %854 = vmatprep.subr.mxu0 %v4309_v18 }
  0x90   : > { %6740 = vst [vmem:[#allocation98_spill] sm:$0xff] %v5085_v20  ;;  %6741 = vst [vmem:[#allocation99_spill] sm:$0xff] %v5087_v28  ;;  %770 = vmatpush2.msra.mxu1 %v769_v32  ;;  %v781_v33 = vand.u32 4294901760, %v780_v49  ;;  %v5098_v27 = vsub.f32 %v4952_v53, %v4983_v37  ;;  %v792_v1 = vsub.f32 %v5073_v47, %v6514_v13  ;;  %v6518_v14 = vand.u32 4294901760, %v5085_v20 }
  0x91   : > { %6742 = vst [vmem:[#allocation100_spill] sm:$0xff] %v5093_v21  ;;  %776 = vmatprep.subr.mxu1 %v775_v41  ;;  %v5105_v32 = vsub.f32 %v199_v52, %v5087_v28  ;;  %v5109_v30 = vsub.f32 %v4965_v7, %v4996_v34  ;;  %844 = vmatprep.mubr.f32.mxu1 %v5079_v26  ;;  %v787_v49 = vand.u32 4294901760, %v786_v19  ;;  %v5113_v53 = vand.u32 4294901760, %v5093_v21 }
  0x92   : > { %6743 = vst [vmem:[#allocation101_spill] sm:$0xff] %v5098_v27  ;;  %782 = vmatpush2.msra.mxu1 %v781_v33  ;;  %v6523_v41 = vand.u32 4294901760, %v5098_v27  ;;  %v5118_v13 = vsub.f32 %v4974_v44, %v5008_v56  ;;  %v793_v51 = vand.u32 4294901760, %v792_v1  ;;  %v798_v52 = vsub.f32 %v5085_v20, %v6518_v14 }
  0x93   : > { %6744 = vst [vmem:[#allocation102_spill] sm:$0xff] %v5105_v32  ;;  %6745 = vst [vmem:[#allocation103_spill] sm:$0xff] %v5109_v30  ;;  %v5124_v7 = vand.u32 4294901760, %v5105_v32  ;;  %v6530_v33 = vand.u32 4294901760, %v5109_v30  ;;  %788 = vmatprep.subr.mxu1 %v787_v49  ;;  %v445_v19 = vsub.f32 %v5093_v21, %v5113_v53  ;;  %v5135_v1 = vsub.f32 %v4985_v24, %v5019_v29 }
  0x94   : > { %6746 = vst [vmem:[#allocation104_spill] sm:$0xff] %v5113_v53  ;;  %v804_v26 = vsub.f32 %v5098_v27, %v6523_v41  ;;  %794 = vmatpush2.msra.mxu1 %v793_v51  ;;  %v799_v14 = vand.u32 4294901760, %v798_v52  ;;  %v5144_v53 = vsub.f32 %v5010_v62, %v5038_v36  ;;  %v6751_v34 = vand.u32 4294901760, %v5118_v13 }
  0x95   : > { %6747 = vst [vmem:[#allocation105_spill] sm:$0xff] %v5124_v7  ;;  %6748 = vst [vmem:[#allocation106_spill] sm:$0xff] %v5135_v1  ;;  %v451_v56 = vsub.f32 %v5105_v32, %v5124_v7  ;;  %v810_v49 = vsub.f32 %v5109_v30, %v6530_v33  ;;  %v5146_v41 = vand.u32 4294901760, %v445_v19  ;;  %v6534_v51 = vand.u32 4294901760, %v5135_v1 }
  0x96   : > { %6749 = vst [vmem:[#allocation107_spill] sm:$0xff] %v5144_v53  ;;  %v805_v44 = vand.u32 4294901760, %v804_v26  ;;  %v816_v24 = vsub.f32 %v5118_v13, %v6751_v34  ;;  %800 = vmatprep.subr.mxu1 %v799_v14  ;;  %v6533_v29 = vand.u32 4294901760, %v5144_v53  ;;  %v5157_v33 = vsub.f32 %v5021_v12, %v5051_v39 }
  0x97   : > { %6750 = vst [vmem:[#allocation108_spill] sm:$0xff] %v5146_v41  ;;  %v5152_v52 = vand.u32 4294901760, %v451_v56  ;;  %v811_v7 = vand.u32 4294901760, %v810_v49  ;;  %447 = vmatprep.mubr.f32.mxu0 %v5146_v41  ;;  %v822_v34 = vsub.f32 %v5135_v1, %v6534_v51  ;;  %v5165_v62 = vsub.f32 %v5044_v2, %v5069_v38  ;;  %v6766_v51 = vld [vmem:[#allocation17_spill] sm:$0xff]  ;;  %v6769_v41 = vld [vmem:[#allocation43_spill] sm:$0xff] }
  0x98   : > { %806 = vmatpush2.msra.mxu1 %v805_v44  ;;  %v817_v26 = vand.u32 4294901760, %v816_v24  ;;  %v828_v56 = vsub.f32 %v5144_v53, %v6533_v29  ;;  %v6532_v12 = vand.u32 4294901760, %v5157_v33  ;;  %v6765_v29 = vld [vmem:[#allocation39_spill] sm:$0xff] }
  0x99   : > { %6752 = vst [vmem:[#allocation109_spill] sm:$0xff] %v5152_v52  ;;  %6753 = vst [vmem:[#allocation110_spill] sm:$0xff] %v5165_v62  ;;  %453 = vmatmul.mubr.f32.vlgmr.msra.gmra.mxu0 %v5152_v52  ;;  %812 = vmatprep.subr.mxu1 %v811_v7  ;;  %v823_v14 = vand.u32 4294901760, %v822_v34  ;;  %v6531_v19 = vand.u32 4294901760, %v5165_v62  ;;  %v6755_v34 = vld [vmem:[#allocation29_spill] sm:$0xff]  ;;  %v6768_v52 = vld [vmem:[#allocation18_spill] sm:$0xff] }
  0x9a   : > { %857 = vmatpush1.msra.mxu0 %v4322_v23  ;;  %818 = vmatpush2.msra.mxu1 %v817_v26  ;;  %v829_v44 = vand.u32 4294901760, %v828_v56  ;;  %v834_v2 = vsub.f32 %v5157_v33, %v6532_v12  ;;  %v6754_v26 = vld [vmem:[#allocation11_spill] sm:$0xff]  ;;  %v6756_v56 = vld [vmem:[#allocation12_spill] sm:$0xff] }
  0x9b   : > { %860 = vmatprep.subr.mxu0 %v4328_v25  ;;  %1046 = vmatprep.mubr.f32.mxu0 %v5093_v21  ;;  %v840_v7 = vsub.f32 %v5165_v62, %v6531_v19  ;;  %v6763_v19 = vld [vmem:[#allocation37_spill] sm:$0xff]  ;;  %v6764_v12 = vld [vmem:[#allocation16_spill] sm:$0xff] }
  0x9c   : > { %863 = vmatpush1.msra.mxu0 %v4342_v31  ;;  %824 = vmatprep.subr.mxu1 %v823_v14  ;;  %v835_v49 = vand.u32 4294901760, %v834_v2  ;;  %v6757_v14 = vld [vmem:[#allocation31_spill] sm:$0xff]  ;;  %v6759_v2 = vld [vmem:[#allocation33_spill] sm:$0xff] }
  0x9d   : > { %866 = vmatprep.subr.mxu0 %v4351_v35  ;;  %830 = vmatpush2.msra.mxu1 %v829_v44  ;;  %v841_v24 = vand.u32 4294901760, %v840_v7  ;;  %v6758_v44 = vld [vmem:[#allocation13_spill] sm:$0xff]  ;;  %v6760_v7 = vld [vmem:[#allocation14_spill] sm:$0xff] }
  0x9e   : > { %869 = vmatpush1.msra.mxu0 %v4364_v40  ;;  %836 = vmatprep.subr.mxu1 %v835_v49  ;;  %v6761_v49 = vld [vmem:[#allocation35_spill] sm:$0xff]  ;;  %v6767_v21 = vld [vmem:[#allocation41_spill] sm:$0xff] }
  0x9f   : > { %872 = vmatprep.subr.mxu0 %v4378_v45  ;;  %842 = vmatpush2.msra.mxu1 %v841_v24  ;;  %v6762_v24 = vld [vmem:[#allocation15_spill] sm:$0xff] }
  0xa0   : > { %875 = vmatpush1.msra.mxu0 %v4404_v59  ;;  %846 = vmatmul.mubr.f32.vlgmr.msra.gmra.mxu1 %v5087_v28  ;;  %v6770_v28 = vld [vmem:[#allocation19_spill] sm:$0xff] }
  0xa1   : > { %878 = vmatprep.subr.mxu0 %v4416_v0  ;;  %1056 = vmatprep.subr.mxu1 %v4289_v3 }
  0xa2   : > { %881 = vmatpush1.msra.mxu0 %v4427_v8  ;;  %1058 = vmatpush1.msra.mxu1 %v4291_v4 }
  0xa3   : > { %884 = vmatprep.subr.mxu0 %v4438_v42  ;;  %1060 = vmatprep.subr.mxu1 %v4293_v5 }
  0xa4   : > { %887 = vmatpush1.msra.mxu0 %v4450_v48  ;;  %1062 = vmatpush1.msra.mxu1 %v4295_v9 }
  0xa5   : > { %890 = vmatprep.subr.mxu0 %v4464_v57  ;;  %1064 = vmatprep.subr.mxu1 %v4297_v10 }
  0xa6   : > { %893 = vmatpush1.msra.mxu0 %v4476_v6  ;;  %1066 = vmatpush1.msra.mxu1 %v4299_v11 }
  0xa7   : > { %896 = vmatprep.subr.mxu0 %v4497_v54  ;;  %1068 = vmatprep.subr.mxu1 %v4302_v15 }
  0xa8   : > { %899 = vmatpush1.msra.mxu0 %v4510_v63  ;;  %1070 = vmatpush1.msra.mxu1 %v4304_v16 }
  0xa9   : > { %902 = vmatprep.subr.mxu0 %v4528_v55  ;;  %1072 = vmatprep.subr.mxu1 %v4306_v17 }
  0xaa   : > { %905 = vmatpush1.msra.mxu0 %v4541_v58  ;;  %1074 = vmatpush1.msra.mxu1 %v4319_v22 }
  0xab   : > { %908 = vmatprep.subr.mxu0 %v4553_v60  ;;  %1076 = vmatprep.subr.mxu1 %v6754_v26 }
  0xac   : > { %911 = vmatpush1.msra.mxu0 %v6755_v34  ;;  %1078 = vmatpush1.msra.mxu1 %v6756_v56 }
  0xad   : > { %914 = vmatprep.subr.mxu0 %v6757_v14  ;;  %1080 = vmatprep.subr.mxu1 %v6758_v44 }
  0xae   : > { %917 = vmatpush1.msra.mxu0 %v6759_v2  ;;  %1082 = vmatpush1.msra.mxu1 %v6760_v7  ;;  %v6771_v7 = vld [vmem:[#allocation45_spill] sm:$0xff] }
  0xaf   : > { %920 = vmatprep.subr.mxu0 %v6761_v49  ;;  %1084 = vmatprep.subr.mxu1 %v6762_v24  ;;  %v6772_v49 = vld [vmem:[#allocation20_spill] sm:$0xff]  ;;  %v6773_v24 = vld [vmem:[#allocation47_spill] sm:$0xff] }
  0xb0   : > { %923 = vmatpush1.msra.mxu0 %v6763_v19  ;;  %1086 = vmatpush1.msra.mxu1 %v6764_v12  ;;  %v6774_v19 = vld [vmem:[#allocation21_spill] sm:$0xff] }
  0xb1   : > { %926 = vmatprep.subr.mxu0 %v6765_v29  ;;  %1088 = vmatprep.subr.mxu1 %v6766_v51  ;;  %v6775_v12 = vld [vmem:[#allocation49_spill] sm:$0xff]  ;;  %v6776_v29 = vld [vmem:[#allocation22_spill] sm:$0xff]  ;;  %v6777_v51 = vld [vmem:[#allocation51_spill] sm:$0xff] }
  0xb2   : > { %929 = vmatpush1.msra.mxu0 %v6767_v21  ;;  %1090 = vmatpush1.msra.mxu1 %v6768_v52  ;;  %v6778_v21 = vld [vmem:[#allocation23_spill] sm:$0xff]  ;;  %v6779_v52 = vld [vmem:[#allocation53_spill] sm:$0xff] }
  0xb3   : > { %932 = vmatprep.subr.mxu0 %v6769_v41  ;;  %1092 = vmatprep.subr.mxu1 %v6770_v28  ;;  %v6780_v41 = vld [vmem:[#allocation24_spill] sm:$0xff]  ;;  %v6781_v28 = vld [vmem:[#allocation55_spill] sm:$0xff] }
  0xb4   : > { %935 = vmatpush1.msra.mxu0 %v6771_v7  ;;  %1094 = vmatpush1.msra.mxu1 %v6772_v49  ;;  %v6782_v7 = vld [vmem:[#allocation25_spill] sm:$0xff] }
  0xb5   : > { %938 = vmatprep.subr.mxu0 %v6773_v24  ;;  %1096 = vmatprep.subr.mxu1 %v6774_v19  ;;  %v6783_v49 = vld [vmem:[#allocation57_spill] sm:$0xff]  ;;  %v6784_v24 = vld [vmem:[#allocation26_spill] sm:$0xff]  ;;  %v6785_v19 = vld [vmem:[#allocation59_spill] sm:$0xff] }
  0xb6   : > { %941 = vmatpush1.msra.mxu0 %v6775_v12  ;;  %1098 = vmatpush1.msra.mxu1 %v6776_v29  ;;  %v6786_v12 = vld [vmem:[#allocation27_spill] sm:$0xff]  ;;  %v6787_v29 = vld [vmem:[#allocation61_spill] sm:$0xff] }
  0xb7   : > { %944 = vmatprep.subr.mxu0 %v6777_v51  ;;  %1100 = vmatprep.subr.mxu1 %v6778_v21  ;;  %v6788_v51 = vld [vmem:[#allocation28_spill] sm:$0xff]  ;;  %v6789_v21 = vld [vmem:[#allocation63_spill] sm:$0xff] }
  0xb8   : > { %947 = vmatpush1.msra.mxu0 %v6779_v52  ;;  %1102 = vmatpush1.msra.mxu1 %v6780_v41  ;;  %v6790_v52 = vld [vmem:[#allocation30_spill] sm:$0xff]  ;;  %v6791_v41 = vld [vmem:[#allocation65_spill] sm:$0xff] }
  0xb9   : > { %950 = vmatprep.subr.mxu0 %v6781_v28  ;;  %1104 = vmatprep.subr.mxu1 %v6782_v7  ;;  %v6792_v28 = vld [vmem:[#allocation32_spill] sm:$0xff]  ;;  %v6793_v7 = vld [vmem:[#allocation67_spill] sm:$0xff] }
  0xba   : > { %953 = vmatpush2.msra.mxu0 %v6783_v49  ;;  %1106 = vmatpush1.msra.mxu1 %v6784_v24  ;;  %v6794_v49 = vld [vmem:[#allocation34_spill] sm:$0xff]  ;;  %v6795_v24 = vld [vmem:[#allocation69_spill] sm:$0xff] }
  0xbb   : > { %956 = vmatprep.subr.mxu0 %v6785_v19  ;;  %1108 = vmatprep.subr.mxu1 %v6786_v12  ;;  %v6796_v19 = vld [vmem:[#allocation36_spill] sm:$0xff]  ;;  %v6797_v12 = vld [vmem:[#allocation71_spill] sm:$0xff] }
  0xbc   : > { %959 = vmatpush2.msra.mxu0 %v6787_v29  ;;  %1110 = vmatpush1.msra.mxu1 %v6788_v51  ;;  %v6798_v29 = vld [vmem:[#allocation38_spill] sm:$0xff]  ;;  %v6799_v51 = vld [vmem:[#allocation73_spill] sm:$0xff] }
  0xbd   : > { %962 = vmatprep.subr.mxu0 %v6789_v21  ;;  %1112 = vmatprep.subr.mxu1 %v6790_v52  ;;  %v6800_v21 = vld [vmem:[#allocation40_spill] sm:$0xff]  ;;  %v6801_v52 = vld [vmem:[#allocation75_spill] sm:$0xff] }
  0xbe   : > { %965 = vmatpush2.msra.mxu0 %v6791_v41  ;;  %1114 = vmatpush1.msra.mxu1 %v6792_v28  ;;  %v6802_v41 = vld [vmem:[#allocation42_spill] sm:$0xff]  ;;  %v6803_v28 = vld [vmem:[#allocation77_spill] sm:$0xff] }
  0xbf   : > { %968 = vmatprep.subr.mxu0 %v6793_v7  ;;  %1116 = vmatprep.subr.mxu1 %v6794_v49  ;;  %v6804_v7 = vld [vmem:[#allocation44_spill] sm:$0xff]  ;;  %v6805_v49 = vld [vmem:[#allocation79_spill] sm:$0xff] }
  0xc0   : > { %971 = vmatpush2.msra.mxu0 %v6795_v24  ;;  %1118 = vmatpush1.msra.mxu1 %v6796_v19  ;;  %v6806_v24 = vld [vmem:[#allocation46_spill] sm:$0xff]  ;;  %v6807_v19 = vld [vmem:[#allocation81_spill] sm:$0xff] }
  0xc1   : > { %974 = vmatprep.subr.mxu0 %v6797_v12  ;;  %1120 = vmatprep.subr.mxu1 %v6798_v29  ;;  %v6808_v12 = vld [vmem:[#allocation48_spill] sm:$0xff]  ;;  %v6809_v29 = vld [vmem:[#allocation83_spill] sm:$0xff] }
  0xc2   : > { %977 = vmatpush2.msra.mxu0 %v6799_v51  ;;  %1122 = vmatpush2.msra.mxu1 %v6800_v21  ;;  %v6810_v51 = vld [vmem:[#allocation50_spill] sm:$0xff]  ;;  %v6811_v21 = vld [vmem:[#allocation85_spill] sm:$0xff] }
  0xc3   : > { %980 = vmatprep.subr.mxu0 %v6801_v52  ;;  %1124 = vmatprep.subr.mxu1 %v6802_v41  ;;  %v6812_v52 = vld [vmem:[#allocation52_spill] sm:$0xff]  ;;  %v6813_v41 = vld [vmem:[#allocation86_spill] sm:$0xff] }
  0xc4   : > { %983 = vmatpush2.msra.mxu0 %v6803_v28  ;;  %1126 = vmatpush2.msra.mxu1 %v6804_v7  ;;  %v6814_v28 = vld [vmem:[#allocation54_spill] sm:$0xff]  ;;  %v6815_v7 = vld [vmem:[#allocation87_spill] sm:$0xff] }
  0xc5   : > { %986 = vmatprep.subr.mxu0 %v6805_v49  ;;  %1128 = vmatprep.subr.mxu1 %v6806_v24  ;;  %v6816_v49 = vld [vmem:[#allocation56_spill] sm:$0xff]  ;;  %v6817_v24 = vld [vmem:[#allocation89_spill] sm:$0xff] }
  0xc6   : > { %989 = vmatpush2.msra.mxu0 %v6807_v19  ;;  %1130 = vmatpush2.msra.mxu1 %v6808_v12  ;;  %v6818_v19 = vld [vmem:[#allocation58_spill] sm:$0xff] }
  0xc7   : > { %992 = vmatprep.subr.mxu0 %v6809_v29  ;;  %1132 = vmatprep.subr.mxu1 %v6810_v51  ;;  %v6819_v29 = vld [vmem:[#allocation60_spill] sm:$0xff]  ;;  %v6820_v51 = vld [vmem:[#allocation93_spill] sm:$0xff] }
  0xc8   : > { %995 = vmatpush2.msra.mxu0 %v6811_v21  ;;  %1134 = vmatpush2.msra.mxu1 %v6812_v52  ;;  %v6821_v21 = vld [vmem:[#allocation62_spill] sm:$0xff] }
  0xc9   : > { %998 = vmatprep.subr.mxu0 %v6813_v41  ;;  %1136 = vmatprep.subr.mxu1 %v6814_v28  ;;  %v6822_v41 = vld [vmem:[#allocation64_spill] sm:$0xff] }
  0xca   : > { %1001 = vmatpush2.msra.mxu0 %v6815_v7  ;;  %1138 = vmatpush2.msra.mxu1 %v6816_v49  ;;  %v6823_v7 = vld [vmem:[#allocation66_spill] sm:$0xff] }
  0xcb   : > { %1004 = vmatprep.subr.mxu0 %v6817_v24  ;;  %1140 = vmatprep.subr.mxu1 %v6818_v19  ;;  %v6824_v24 = vld [vmem:[#allocation68_spill] sm:$0xff] }
  0xcc   : > { %1007 = vmatpush2.msra.mxu0 %v5016_v50  ;;  %1142 = vmatpush2.msra.mxu1 %v6819_v29  ;;  %v6825_v50 = vld [vmem:[#allocation70_spill] sm:$0xff] }
  0xcd   : > { %1010 = vmatprep.subr.mxu0 %v6820_v51  ;;  %1144 = vmatprep.subr.mxu1 %v6821_v21  ;;  %v6826_v51 = vld [vmem:[#allocation72_spill] sm:$0xff] }
  0xce   : > { %1013 = vmatpush2.msra.mxu0 %v5042_v61  ;;  %1146 = vmatpush2.msra.mxu1 %v6822_v41  ;;  %v6827_v61 = vld [vmem:[#allocation74_spill] sm:$0xff] }
  0xcf   : > { %1016 = vmatprep.subr.mxu0 %v5061_v46  ;;  %1148 = vmatprep.subr.mxu1 %v6823_v7  ;;  %v6828_v46 = vld [vmem:[#allocation76_spill] sm:$0xff] }
  0xd0   : > { %1019 = vmatpush2.msra.mxu0 %v5073_v47  ;;  %1150 = vmatpush2.msra.mxu1 %v6824_v24  ;;  %v6829_v47 = vld [vmem:[#allocation78_spill] sm:$0xff] }
  0xd1   : > { %1022 = vmatprep.subr.mxu0 %v5085_v20  ;;  %1152 = vmatprep.subr.mxu1 %v6825_v50  ;;  %v6830_v20 = vld [vmem:[#allocation80_spill] sm:$0xff] }
  0xd2   : > { %1025 = vmatpush2.msra.mxu0 %v5098_v27  ;;  %1154 = vmatpush2.msra.mxu1 %v6826_v51  ;;  %v6831_v27 = vld [vmem:[#allocation82_spill] sm:$0xff] }
  0xd3   : > { %1028 = vmatprep.subr.mxu0 %v5109_v30  ;;  %1156 = vmatprep.subr.mxu1 %v6827_v61  ;;  %v6832_v30 = vld [vmem:[#allocation84_spill] sm:$0xff] }
  0xd4   : > { %1031 = vmatpush2.msra.mxu0 %v5118_v13  ;;  %1158 = vmatpush2.msra.mxu1 %v6828_v46 }
  0xd5   : > { %1034 = vmatprep.subr.mxu0 %v5135_v1  ;;  %1160 = vmatprep.subr.mxu1 %v6829_v47  ;;  %v6833_v1 = vand.u32 4294901760, %v4309_v18  ;;  %v6840_v18 = vand.u32 4294901760, %v4351_v35  ;;  %v6846_v35 = vand.u32 4294901760, %v4416_v0  ;;  %v6850_v0 = vand.u32 4294901760, %v4464_v57  ;;  %v6866_v57 = vld [vmem:[#allocation16_spill] sm:$0xff] }
  0xd6   : > { %1037 = vmatpush2.msra.mxu0 %v5144_v53  ;;  %1162 = vmatpush2.msra.mxu1 %v6830_v20  ;;  %v6834_v53 = vand.u32 4294901760, %v4322_v23  ;;  %v6835_v20 = vld [vmem:[#allocation88_spill] sm:$0xff]  ;;  %v6841_v23 = vand.u32 4294901760, %v4364_v40  ;;  %v6847_v40 = vand.u32 4294901760, %v4427_v8  ;;  %v6860_v8 = vld [vmem:[#allocation14_spill] sm:$0xff] }
  0xd7   : > { %1040 = vmatprep.subr.mxu0 %v5157_v33  ;;  %1164 = vmatprep.subr.mxu1 %v6831_v27  ;;  %v6836_v27 = vand.u32 4294901760, %v4328_v25  ;;  %v6842_v25 = vand.u32 4294901760, %v4378_v45  ;;  %v6848_v45 = vand.u32 4294901760, %v4438_v42  ;;  %v6863_v42 = vld [vmem:[#allocation15_spill] sm:$0xff] }
  0xd8   : > { %1043 = vmatpush2.msra.mxu0 %v5165_v62  ;;  %1166 = vmatpush2.msra.mxu1 %v6832_v30  ;;  %v6837_v62 = vld [vmem:[#allocation90_spill] sm:$0xff]  ;;  %v6838_v30 = vand.u32 4294901760, %v4342_v31  ;;  %v6844_v31 = vand.u32 4294901760, %v4404_v59  ;;  %v6849_v59 = vand.u32 4294901760, %v4450_v48  ;;  %v6864_v48 = vld [vmem:[#allocation37_spill] sm:$0xff] }
  0xd9   : > { %1049 = vmatmul.mubr.f32.vlgmr.msra.gmra.mxu0 %v5105_v32  ;;  %1168 = vmatprep.subr.mxu1 %v4972_v43  ;;  %v6839_v32 = vld [vmem:[#allocation92_spill] sm:$0xff] }
  0xda   : > { %1199 = vmatprep.subr.mxu0 %v6833_v1  ;;  %1170 = vmatpush2.msra.mxu1 %v4983_v37  ;;  %v6872_v1 = vld [vmem:[#allocation18_spill] sm:$0xff] }
  0xdb   : > { %1203 = vmatpush1.msra.mxu0 %v6834_v53  ;;  %1172 = vmatprep.subr.mxu1 %v6835_v20 }
  0xdc   : > { %1207 = vmatprep.subr.mxu0 %v6836_v27  ;;  %1174 = vmatpush2.msra.mxu1 %v6837_v62  ;;  %v6843_v27 = vld [vmem:[#allocation104_spill] sm:$0xff] }
  0xdd   : > { %1211 = vmatpush1.msra.mxu0 %v6838_v30  ;;  %1176 = vmatprep.subr.mxu1 %v6839_v32  ;;  %v6845_v30 = vld [vmem:[#allocation105_spill] sm:$0xff] }
  0xde   : > { %1215 = vmatprep.subr.mxu0 %v6840_v18  ;;  %1178 = vmatpush2.msra.mxu1 %v5038_v36  ;;  %v6879_v18 = vld [vmem:[#allocation47_spill] sm:$0xff] }
  0xdf   : > { %1219 = vmatpush1.msra.mxu0 %v6841_v23  ;;  %1180 = vmatprep.subr.mxu1 %v5051_v39  ;;  %v6880_v23 = vand.u32 4294901760, %v6879_v18 }
  0xe0   : > { %1223 = vmatprep.subr.mxu0 %v6842_v25  ;;  %1182 = vmatpush2.msra.mxu1 %v5069_v38  ;;  %v6881_v25 = vld [vmem:[#allocation21_spill] sm:$0xff] }
  0xe1   : > { %1186 = vmatprep.mubr.f32.mxu1 %v6843_v27  ;;  %1227 = vmatpush1.msra.mxu0 %v6844_v31  ;;  %v6882_v31 = vld [vmem:[#allocation49_spill] sm:$0xff] }
  0xe2   : > { %1190 = vmatmul.mubr.f32.vlgmr.msra.gmra.mxu1 %v6845_v30  ;;  %1231 = vmatprep.subr.mxu0 %v6846_v35  ;;  %v6883_v35 = vand.u32 4294901760, %v6882_v31 }
  0xe3   : > { %1462 = vmatprep.subr.mxu1 %v4289_v3  ;;  %1235 = vmatpush1.msra.mxu0 %v6847_v40  ;;  %v6851_v3 = vand.u32 4294901760, %v4476_v6  ;;  %v6884_v40 = vld [vmem:[#allocation22_spill] sm:$0xff] }
  0xe4   : > { %1464 = vmatpush1.msra.mxu1 %v4291_v4  ;;  %1239 = vmatprep.subr.mxu0 %v6848_v45  ;;  %v6852_v4 = vand.u32 4294901760, %v4497_v54  ;;  %v6865_v54 = vand.u32 4294901760, %v6864_v48  ;;  %v6885_v45 = vld [vmem:[#allocation51_spill] sm:$0xff] }
  0xe5   : > { %1466 = vmatprep.subr.mxu1 %v4293_v5  ;;  %1243 = vmatpush1.msra.mxu0 %v6849_v59  ;;  %v6853_v5 = vand.u32 4294901760, %v4510_v63  ;;  %v6867_v63 = vld [vmem:[#allocation39_spill] sm:$0xff]  ;;  %v6886_v59 = vand.u32 4294901760, %v6885_v45 }
  0xe6   : > { %1468 = vmatpush1.msra.mxu1 %v4295_v9  ;;  %1247 = vmatprep.subr.mxu0 %v6850_v0  ;;  %v6854_v9 = vand.u32 4294901760, %v4528_v55  ;;  %v6868_v6 = vand.u32 4294901760, %v6867_v63  ;;  %v6869_v55 = vld [vmem:[#allocation17_spill] sm:$0xff]  ;;  %v6887_v0 = vld [vmem:[#allocation23_spill] sm:$0xff] }
  0xe7   : > { %1470 = vmatprep.subr.mxu1 %v4297_v10  ;;  %1251 = vmatpush1.msra.mxu0 %v6851_v3  ;;  %v6855_v10 = vand.u32 4294901760, %v4541_v58  ;;  %v6870_v58 = vld [vmem:[#allocation41_spill] sm:$0xff] }
  0xe8   : > { %1472 = vmatpush1.msra.mxu1 %v4299_v11  ;;  %1255 = vmatprep.subr.mxu0 %v6852_v4  ;;  %v6856_v11 = vand.u32 4294901760, %v4553_v60  ;;  %v6871_v53 = vand.u32 4294901760, %v6870_v58  ;;  %v6888_v3 = vld [vmem:[#allocation53_spill] sm:$0xff] }
  0xe9   : > { %1474 = vmatprep.subr.mxu1 %v4302_v15  ;;  %1259 = vmatpush1.msra.mxu0 %v6853_v5  ;;  %v6857_v15 = vand.u32 4294901760, %v6755_v34  ;;  %v6889_v4 = vand.u32 4294901760, %v6888_v3  ;;  %v6890_v5 = vld [vmem:[#allocation24_spill] sm:$0xff] }
  0xea   : > { %1476 = vmatpush1.msra.mxu1 %v4304_v16  ;;  %1263 = vmatprep.subr.mxu0 %v6854_v9  ;;  %v6858_v16 = vand.u32 4294901760, %v6757_v14  ;;  %v6876_v14 = vld [vmem:[#allocation45_spill] sm:$0xff]  ;;  %v6891_v9 = vld [vmem:[#allocation55_spill] sm:$0xff] }
  0xeb   : > { %1478 = vmatprep.subr.mxu1 %v4306_v17  ;;  %1267 = vmatpush1.msra.mxu0 %v6855_v10  ;;  %v6859_v17 = vand.u32 4294901760, %v6759_v2  ;;  %v6878_v2 = vld [vmem:[#allocation20_spill] sm:$0xff]  ;;  %v6892_v10 = vand.u32 4294901760, %v6891_v9 }
  0xec   : > { %1480 = vmatpush1.msra.mxu1 %v4319_v22  ;;  %1271 = vmatprep.subr.mxu0 %v6856_v11  ;;  %v6861_v22 = vld [vmem:[#allocation35_spill] sm:$0xff]  ;;  %v6893_v11 = vld [vmem:[#allocation25_spill] sm:$0xff] }
  0xed   : > { %1482 = vmatprep.subr.mxu1 %v6754_v26  ;;  %1275 = vmatpush1.msra.mxu0 %v6857_v15  ;;  %v6862_v60 = vand.u32 4294901760, %v6861_v22  ;;  %v6873_v26 = vld [vmem:[#allocation43_spill] sm:$0xff]  ;;  %v6894_v15 = vld [vmem:[#allocation57_spill] sm:$0xff] }
  0xee   : > { %1484 = vmatpush1.msra.mxu1 %v6756_v56  ;;  %1279 = vmatprep.subr.mxu0 %v6858_v16  ;;  %v6874_v34 = vand.u32 4294901760, %v6873_v26  ;;  %v6875_v56 = vld [vmem:[#allocation19_spill] sm:$0xff]  ;;  %v6895_v16 = vand.u32 4294901760, %v6894_v15 }
  0xef   : > { %1486 = vmatprep.subr.mxu1 %v6758_v44  ;;  %1283 = vmatpush1.msra.mxu0 %v6859_v17  ;;  %v6877_v44 = vand.u32 4294901760, %v6876_v14  ;;  %v6896_v17 = vld [vmem:[#allocation26_spill] sm:$0xff] }
  0xf0   : > { %1488 = vmatpush1.msra.mxu1 %v6860_v8  ;;  %1287 = vmatprep.subr.mxu0 %v6862_v60  ;;  %v6897_v8 = vld [vmem:[#allocation59_spill] sm:$0xff] }
  0xf1   : > { %1490 = vmatprep.subr.mxu1 %v6863_v42  ;;  %1291 = vmatpush1.msra.mxu0 %v6865_v54  ;;  %v6898_v22 = vand.u32 4294901760, %v6897_v8  ;;  %v6899_v60 = vld [vmem:[#allocation27_spill] sm:$0xff]  ;;  %v6900_v42 = vld [vmem:[#allocation61_spill] sm:$0xff]  ;;  %v6902_v54 = vld [vmem:[#allocation28_spill] sm:$0xff] }
  0xf2   : > { %1492 = vmatpush1.msra.mxu1 %v6866_v57  ;;  %1295 = vmatprep.subr.mxu0 %v6868_v6  ;;  %v6901_v48 = vand.u32 4294901760, %v6900_v42  ;;  %v6903_v57 = vld [vmem:[#allocation63_spill] sm:$0xff]  ;;  %v6905_v6 = vld [vmem:[#allocation30_spill] sm:$0xff] }
  0xf3   : > { %1494 = vmatprep.subr.mxu1 %v6869_v55  ;;  %1299 = vmatpush1.msra.mxu0 %v6871_v53  ;;  %v6904_v63 = vand.u32 4294901760, %v6903_v57  ;;  %v6906_v55 = vld [vmem:[#allocation65_spill] sm:$0xff]  ;;  %v6908_v53 = vld [vmem:[#allocation32_spill] sm:$0xff]  ;;  %v6934_v8 = vld [vmem:[#allocation50_spill] sm:$0xff] }
  0xf4   : > { %1496 = vmatpush1.msra.mxu1 %v6872_v1  ;;  %1303 = vmatprep.subr.mxu0 %v6874_v34  ;;  %v6907_v58 = vand.u32 4294901760, %v6906_v55  ;;  %v6909_v1 = vld [vmem:[#allocation67_spill] sm:$0xff]  ;;  %v6911_v34 = vld [vmem:[#allocation34_spill] sm:$0xff] }
  0xf5   : > { %1498 = vmatprep.subr.mxu1 %v6875_v56  ;;  %1307 = vmatpush1.msra.mxu0 %v6877_v44  ;;  %v6910_v26 = vand.u32 4294901760, %v6909_v1  ;;  %v6912_v56 = vld [vmem:[#allocation69_spill] sm:$0xff]  ;;  %v6914_v44 = vld [vmem:[#allocation36_spill] sm:$0xff]  ;;  %v6937_v42 = vld [vmem:[#allocation86_spill] sm:$0xff] }
  0xf6   : > { %1500 = vmatpush1.msra.mxu1 %v6878_v2  ;;  %1311 = vmatprep.subr.mxu0 %v6880_v23  ;;  %v6913_v14 = vand.u32 4294901760, %v6912_v56  ;;  %v6915_v2 = vld [vmem:[#allocation71_spill] sm:$0xff]  ;;  %v6917_v23 = vld [vmem:[#allocation38_spill] sm:$0xff] }
  0xf7   : > { %1502 = vmatprep.subr.mxu1 %v6881_v25  ;;  %1315 = vmatpush1.msra.mxu0 %v6883_v35  ;;  %v6916_v18 = vand.u32 4294901760, %v6915_v2  ;;  %v6918_v25 = vld [vmem:[#allocation73_spill] sm:$0xff]  ;;  %v6920_v35 = vld [vmem:[#allocation40_spill] sm:$0xff]  ;;  %v6943_v55 = vld [vmem:[#allocation91_spill] sm:$0xff] }
  0xf8   : > { %1504 = vmatpush1.msra.mxu1 %v6884_v40  ;;  %1319 = vmatprep.subr.mxu0 %v6886_v59  ;;  %v6919_v31 = vand.u32 4294901760, %v6918_v25  ;;  %v6921_v40 = vld [vmem:[#allocation75_spill] sm:$0xff]  ;;  %v6923_v59 = vld [vmem:[#allocation42_spill] sm:$0xff] }
  0xf9   : > { %1506 = vmatprep.subr.mxu1 %v6887_v0  ;;  %1323 = vmatpush1.msra.mxu0 %v6889_v4  ;;  %v6922_v45 = vand.u32 4294901760, %v6921_v40  ;;  %v6924_v0 = vld [vmem:[#allocation77_spill] sm:$0xff]  ;;  %v6926_v4 = vld [vmem:[#allocation44_spill] sm:$0xff]  ;;  %v6947_v1 = vld [vmem:[#allocation94_spill] sm:$0xff] }
  0xfa   : > { %1508 = vmatpush1.msra.mxu1 %v6890_v5  ;;  %1327 = vmatprep.subr.mxu0 %v6892_v10  ;;  %v6925_v3 = vand.u32 4294901760, %v6924_v0  ;;  %v6927_v5 = vld [vmem:[#allocation79_spill] sm:$0xff]  ;;  %v6929_v10 = vld [vmem:[#allocation46_spill] sm:$0xff] }
  0xfb   : > { %1510 = vmatprep.subr.mxu1 %v6893_v11  ;;  %1331 = vmatpush2.msra.mxu0 %v6895_v16  ;;  %v6928_v9 = vand.u32 4294901760, %v6927_v5  ;;  %v6930_v11 = vld [vmem:[#allocation81_spill] sm:$0xff]  ;;  %v6932_v16 = vld [vmem:[#allocation83_spill] sm:$0xff] }
  0xfc   : > { %1512 = vmatpush1.msra.mxu1 %v6896_v17  ;;  %1335 = vmatprep.subr.mxu0 %v6898_v22  ;;  %v6931_v15 = vand.u32 4294901760, %v6930_v11  ;;  %v6933_v17 = vand.u32 4294901760, %v6932_v16  ;;  %v6935_v22 = vld [vmem:[#allocation85_spill] sm:$0xff] }
  0xfd   : > { %1514 = vmatprep.subr.mxu1 %v6899_v60  ;;  %1339 = vmatpush2.msra.mxu0 %v6901_v48  ;;  %v6936_v60 = vand.u32 4294901760, %v6935_v22  ;;  %v6938_v48 = vand.u32 4294901760, %v6937_v42  ;;  %v298_v5 = vld [vmem:[#allocation5 + $0x300] sm:$0xff]  ;;  %v6967_v22 = vand.u32 4294901760, %v5157_v33 }
  0xfe   : > { %1516 = vmatpush1.msra.mxu1 %v6902_v54  ;;  %1343 = vmatprep.subr.mxu0 %v6904_v63  ;;  %v6939_v54 = vld [vmem:[#allocation87_spill] sm:$0xff]  ;;  %v6941_v63 = vld [vmem:[#allocation89_spill] sm:$0xff]  ;;  %v5525_v42 = vand.u32 4294901760, %v298_v5 }
  0xff   : > { %1518 = vmatprep.subr.mxu1 %v6905_v6  ;;  %1347 = vmatpush2.msra.mxu0 %v6907_v58  ;;  %v6940_v57 = vand.u32 4294901760, %v6939_v54  ;;  %v6942_v6 = vand.u32 4294901760, %v6941_v63  ;;  %v6944_v58 = vand.u32 4294901760, %v6943_v55  ;;  %v6969_v54 = vld [vmem:[#allocation110_spill] sm:$0xff]  ;;  %v6974_v55 = vld [vmem:[#allocation99_spill] sm:$0xff] }
 0x100   : > { %1520 = vmatpush1.msra.mxu1 %v6908_v53  ;;  %1351 = vmatprep.subr.mxu0 %v6910_v26  ;;  %v6945_v53 = vld [vmem:[#allocation93_spill] sm:$0xff]  ;;  %v6948_v26 = vand.u32 4294901760, %v6947_v1 }
 0x101   : > { %1522 = vmatprep.subr.mxu1 %v6911_v34  ;;  %1355 = vmatpush2.msra.mxu0 %v6913_v14  ;;  %v307_v34 = vld [vmem:[#allocation5 + $0x348] sm:$0xff]  ;;  %v305_v14 = vld [vmem:[#allocation5 + $0x338] sm:$0xff] }
 0x102   : > { %1524 = vmatpush1.msra.mxu1 %v6914_v44  ;;  %1359 = vmatprep.subr.mxu0 %v6916_v18  ;;  %v6951_v44 = vld [vmem:[#allocation96_spill] sm:$0xff]  ;;  %v5485_v40 = vand.u32 4294901760, %v305_v14 }
 0x103   : > { %1526 = vmatprep.subr.mxu1 %v6917_v23  ;;  %1363 = vmatpush2.msra.mxu0 %v6919_v31  ;;  %v6952_v2 = vand.u32 4294901760, %v6951_v44  ;;  %v6954_v23 = vld [vmem:[#allocation98_spill] sm:$0xff]  ;;  %v302_v31 = vld [vmem:[#allocation5 + $0x320] sm:$0xff] }
 0x104   : > { %1528 = vmatpush2.msra.mxu1 %v6920_v35  ;;  %1367 = vmatprep.subr.mxu0 %v6922_v45  ;;  %v6955_v25 = vand.u32 4294901760, %v6954_v23  ;;  %v301_v45 = vld [vmem:[#allocation5 + $0x318] sm:$0xff] }
 0x105   : > { %1530 = vmatprep.subr.mxu1 %v6923_v59  ;;  %1371 = vmatpush2.msra.mxu0 %v6925_v3  ;;  %v299_v3 = vld [vmem:[#allocation5 + $0x308] sm:$0xff] }
 0x106   : > { %1532 = vmatpush2.msra.mxu1 %v6926_v4  ;;  %1375 = vmatprep.subr.mxu0 %v6928_v9  ;;  %v6960_v4 = vand.u32 4294901760, %v5118_v13  ;;  %v6964_v13 = vld [vmem:[#allocation107_spill] sm:$0xff] }
 0x107   : > { %1534 = vmatprep.subr.mxu1 %v6929_v10  ;;  %1379 = vmatpush2.msra.mxu0 %v6931_v15  ;;  %v6962_v10 = vld [vmem:[#allocation106_spill] sm:$0xff]  ;;  %v5509_v15 = vand.u32 4294901760, %v301_v45  ;;  %v6965_v16 = vand.u32 4294901760, %v6964_v13 }
 0x108   : > { %1536 = vmatpush2.msra.mxu1 %v6808_v12  ;;  %1383 = vmatprep.subr.mxu0 %v6933_v17  ;;  %v201_v12 = vld [vmem:[%s4279_s15 + $0x10] sm:$0xff]  ;;  %v6963_v11 = vand.u32 4294901760, %v6962_v10  ;;  %v5514_v17 = vand.u32 4294901760, %v299_v3  ;;  %v291_v13 = vld [vmem:[#allocation5 + $0x2c8] sm:$0xff] }
 0x109   : > { %1538 = vmatprep.subr.mxu1 %v6934_v8  ;;  %1387 = vmatpush2.msra.mxu0 %v6936_v60  ;;  %v5517_v8 = vsub.f32 %v305_v14, %v5485_v40  ;;  %v6968_v60 = vld [vmem:[#allocation82_spill] sm:$0xff] }
 0x10a   : > { %1540 = vmatpush2.msra.mxu1 %v6812_v52  ;;  %1391 = vmatprep.subr.mxu0 %v6938_v48  ;;  %v308_v52 = vld [vmem:[#allocation5 + $0x350] sm:$0xff] }
 0x10b   : > { %1542 = vmatprep.subr.mxu1 %v6814_v28  ;;  %1395 = vmatpush2.msra.mxu0 %v6940_v57  ;;  %v6946_v28 = vand.u32 4294901760, %v6945_v53  ;;  %v6970_v57 = vand.u32 4294901760, %v6969_v54  ;;  %v1720_v53 = vand.u32 4294901760, %v5517_v8 }
 0x10c   : > { %1544 = vmatpush2.msra.mxu1 %v6816_v49  ;;  %1399 = vmatprep.subr.mxu0 %v6942_v6  ;;  %v312_v49 = vsel %vm310_vm0, %v201_v12, 0  ;;  %v6971_v12 = vld [vmem:[#allocation97_spill] sm:$0xff]  ;;  %v6973_v6 = vld [vmem:[#allocation84_spill] sm:$0xff] }
 0x10d   : > { %1546 = vmatprep.subr.mxu1 %v6818_v19  ;;  %1403 = vmatpush2.msra.mxu0 %v6944_v58  ;;  %v6949_v19 = vld [vmem:[#allocation95_spill] sm:$0xff]  ;;  %v5475_v18 = vand.u32 4294901760, %v312_v49  ;;  %v5540_v58 = vsub.f32 %v301_v45, %v5509_v15 }
 0x10e   : > { %1548 = vmatpush2.msra.mxu1 %v6819_v29  ;;  %1407 = vmatprep.subr.mxu0 %v6946_v28  ;;  %v6950_v56 = vand.u32 4294901760, %v6949_v19  ;;  %v5470_v29 = vand.u32 4294901760, %v308_v52  ;;  %v5547_v28 = vsub.f32 %v299_v3, %v5514_v17 }
 0x10f   : > { %1550 = vmatprep.subr.mxu1 %v6821_v21  ;;  %1411 = vmatpush2.msra.mxu0 %v6948_v26  ;;  %v304_v21 = vld [vmem:[#allocation5 + $0x330] sm:$0xff]  ;;  %6953 = vst [vmem:[#allocation11_spill] sm:$0xff] %v5475_v18  ;;  %v5501_v9 = vsub.f32 %v312_v49, %v5475_v18  ;;  %v5552_v49 = vsub.f32 %v298_v5, %v5525_v42  ;;  %v1738_v19 = vand.u32 4294901760, %v5540_v58  ;;  %v246_v5 = vld [vmem:[#allocation5 + $0x160] sm:$0xff] }
 0x110   : > { %1552 = vmatpush2.msra.mxu1 %v6822_v41  ;;  %1415 = vmatprep.subr.mxu0 %v6950_v56  ;;  %v5480_v41 = vand.u32 4294901760, %v307_v34  ;;  %v5490_v0 = vand.u32 4294901760, %v304_v21  ;;  %v1744_v56 = vand.u32 4294901760, %v5547_v28 }
 0x111   : > { %1554 = vmatprep.subr.mxu1 %v6823_v7  ;;  %1419 = vmatpush2.msra.mxu0 %v6952_v2  ;;  %v6956_v7 = vld [vmem:[#allocation101_spill] sm:$0xff]  ;;  %6961 = vst [vmem:[#allocation29_spill] sm:$0xff] %v5501_v9  ;;  %v5532_v63 = vand.u32 4294901760, %v5501_v9  ;;  %v1750_v44 = vand.u32 4294901760, %v5552_v49 }
 0x112   : > { %1556 = vmatpush2.msra.mxu1 %v6824_v24  ;;  %1423 = vmatprep.subr.mxu0 %v6955_v25  ;;  %v6957_v35 = vand.u32 4294901760, %v6956_v7  ;;  %v6958_v24 = vld [vmem:[#allocation103_spill] sm:$0xff]  ;;  %v1745_v23 = vsub.f32 %v5547_v28, %v1744_v56  ;;  %v6559_v25 = vmov 0.0  }
 0x113   : > { %1558 = vmatprep.subr.mxu1 %v6825_v50  ;;  %v6959_v59 = vand.u32 4294901760, %v6958_v24  ;;  %v5493_v50 = vsub.f32 %v308_v52, %v5470_v29  ;;  %1453 = vmatprep.mubr.f32.mxu0 %v6971_v12  ;;  %6972 = vst [vmem:[#allocation12_spill] sm:$0xff] %v5532_v63  ;;  %v1674_v26 = vsub.f32 %v5501_v9, %v5532_v63  ;;  %v297_v24 = vld [vmem:[#allocation5 + $0x2f8] sm:$0xff] }
 0x114   : > { %1427 = vmatpush2.msra.mxu0 %v6957_v35  ;;  %1560 = vmatpush2.msra.mxu1 %v6826_v51  ;;  %v5498_v51 = vand.u32 4294901760, %v302_v31  ;;  %v1746_v45 = vand.u32 4294901760, %v1745_v23  ;;  %v5609_v10 = vand.u32 4294901760, %v297_v24  ;;  %v279_v23 = vld [vmem:[#allocation5 + $0x268] sm:$0xff] }
 0x115   : > { %1431 = vmatprep.subr.mxu0 %v6959_v59  ;;  %1562 = vmatprep.subr.mxu1 %v6827_v61  ;;  %v5507_v61 = vsub.f32 %v307_v34, %v5480_v41  ;;  %v1708_v48 = vand.u32 4294901760, %v5493_v50  ;;  %v249_v59 = vld [vmem:[#allocation5 + $0x178] sm:$0xff] }
 0x116   : > { %1435 = vmatpush2.msra.mxu0 %v6960_v4  ;;  %1564 = vmatpush2.msra.mxu1 %v6828_v46  ;;  %v6966_v46 = vld [vmem:[#allocation80_spill] sm:$0xff]  ;;  %v5535_v33 = vsub.f32 %v302_v31, %v5498_v51  ;;  %v1751_v31 = vsub.f32 %v5552_v49, %v1750_v44  ;;  %v294_v4 = vld [vmem:[#allocation5 + $0x2e0] sm:$0xff] }
 0x117   : > { %1439 = vmatprep.subr.mxu0 %v6963_v11  ;;  %1566 = vmatprep.subr.mxu1 %v6829_v47  ;;  %v5523_v47 = vsub.f32 %v304_v21, %v5490_v0  ;;  %v1714_v52 = vand.u32 4294901760, %v5507_v61  ;;  %v1709_v1 = vsub.f32 %v5493_v50, %v1708_v48  ;;  %v1739_v21 = vsub.f32 %v5540_v58, %v1738_v19 }
 0x118   : > { %1443 = vmatpush2.msra.mxu0 %v6965_v16  ;;  %1568 = vmatpush2.msra.mxu1 %v6966_v46  ;;  %v1752_v3 = vand.u32 4294901760, %v1751_v31  ;;  %v5611_v11 = vand.u32 4294901760, %v249_v59  ;;  %v5615_v16 = vand.u32 4294901760, %v294_v4  ;;  %v5617_v46 = vand.u32 4294901760, %v246_v5 }
 0x119   : > { %1447 = vmatprep.subr.mxu0 %v6967_v22  ;;  %1570 = vmatprep.subr.mxu1 %v6968_v60  ;;  %v1715_v34 = vsub.f32 %v5507_v61, %v1714_v52  ;;  %v1740_v35 = vand.u32 4294901760, %v1739_v21  ;;  %v243_v22 = vld [vmem:[#allocation5 + $0x148] sm:$0xff]  ;;  %v288_v60 = vld [vmem:[#allocation5 + $0x2b0] sm:$0xff]  ;;  %v234_v21 = vld [vmem:[#allocation5 + $0x100] sm:$0xff] }
 0x11a   : > { %1451 = vmatpush2.msra.mxu0 %v6970_v57  ;;  %1572 = vmatpush2.msra.mxu1 %v6973_v6  ;;  %v5624_v54 = vsub.f32 %v249_v59, %v5611_v11  ;;  %v5626_v57 = vand.u32 4294901760, %v291_v13  ;;  %v240_v6 = vld [vmem:[#allocation5 + $0x130] sm:$0xff] }
 0x11b   : > { %1455 = vmatmul.mubr.f32.vlgmr.msra.gmra.mxu0 %v6974_v55  ;;  %1574 = vmatprep.subr.mxu1 %v4972_v43  ;;  %v1726_v43 = vand.u32 4294901760, %v5523_v47 }
 0x11c   : > { %1623 = vmatprep.subr.mxu0 %v5470_v29  ;;  %1576 = vmatpush2.msra.mxu1 %v4983_v37  ;;  %v1732_v37 = vand.u32 4294901760, %v5535_v33 }
 0x11d   : > { %1625 = vmatpush1.msra.mxu0 %v5480_v41  ;;  %1578 = vmatprep.subr.mxu1 %v6835_v20  ;;  %v1721_v20 = vsub.f32 %v5517_v8, %v1720_v53  ;;  %v1727_v14 = vsub.f32 %v5523_v47, %v1726_v43 }
 0x11e   : > { %1627 = vmatprep.subr.mxu0 %v5485_v40  ;;  %1580 = vmatpush2.msra.mxu1 %v6837_v62  ;;  %v1710_v62 = vand.u32 4294901760, %v1709_v1  ;;  %v1733_v2 = vsub.f32 %v5535_v33, %v1732_v37  ;;  %v5629_v1 = vsub.f32 %v297_v24, %v5609_v10  ;;  %v5710_v24 = vand.u32 4294901760, %v279_v23 }
 0x11f   : > { %1629 = vmatpush1.msra.mxu0 %v5490_v0  ;;  %1582 = vmatprep.subr.mxu1 %v6839_v32  ;;  %v5583_v32 = vand.u32 4294901760, %v1674_v26  ;;  %v5634_v26 = vand.u32 4294901760, %v243_v22 }
 0x120   : > { %1631 = vmatprep.subr.mxu0 %v5498_v51  ;;  %1584 = vmatpush2.msra.mxu1 %v5038_v36  ;;  %v1716_v36 = vand.u32 4294901760, %v1715_v34  ;;  %v1734_v7 = vand.u32 4294901760, %v1733_v2  ;;  %v285_v34 = vld [vmem:[#allocation5 + $0x298] sm:$0xff]  ;;  %v5645_v2 = vsub.f32 %v294_v4, %v5615_v16  ;;  %6983 = vst [vmem:[#allocation60_spill] sm:$0xff] %v5710_v24  ;;  %v276_v4 = vld [vmem:[#allocation5 + $0x250] sm:$0xff] }
 0x121   : > { %1633 = vmatpush1.msra.mxu0 %v5509_v15  ;;  %1586 = vmatprep.subr.mxu1 %v5051_v39  ;;  %6975 = vst [vmem:[#allocation31_spill] sm:$0xff] %v5583_v32  ;;  %v1722_v39 = vand.u32 4294901760, %v1721_v20  ;;  %6976 = vst [vmem:[#allocation13_spill] sm:$0xff] %v5634_v26  ;;  %v5640_v20 = vsub.f32 %v246_v5, %v5617_v46 }
 0x122   : > { %1635 = vmatprep.subr.mxu0 %v5514_v17  ;;  %1588 = vmatpush2.msra.mxu1 %v5069_v38  ;;  %v1728_v38 = vand.u32 4294901760, %v1727_v14  ;;  %v237_v14 = vld [vmem:[#allocation5 + $0x118] sm:$0xff] }
 0x123   : > { %1590 = vmatprep.mubr.f32.mxu1 %v6971_v12  ;;  %1637 = vmatpush1.msra.mxu0 %v5525_v42 }
 0x124   : > { %1592 = vmatmul.mubr.f32.vlgmr.msra.gmra.mxu1 %v6974_v55  ;;  %1670 = vmatprep.mubr.f32.mxu0 %v6559_v25 }
 0x125   : > { %1711 = vmatprep.subr.mxu1 %v1710_v62  ;;  %1820 = vmatprep.subr.mxu0 %v5493_v50  ;;  %v5642_v62 = vand.u32 4294901760, %v288_v60  ;;  %v5650_v50 = vand.u32 4294901760, %v240_v6 }
 0x126   : > { %1676 = vmatmul.mubr.f32.vlgmr.msra.gmra.mxu0 %v5583_v32  ;;  %1717 = vmatpush1.msra.mxu1 %v1716_v36  ;;  %v282_v36 = vld [vmem:[#allocation5 + $0x280] sm:$0xff] }
 0x127   : > { %1823 = vmatpush1.msra.mxu0 %v5507_v61  ;;  %1723 = vmatprep.subr.mxu1 %v1722_v39  ;;  %6977 = vst [vmem:[#allocation33_spill] sm:$0xff] %v5642_v62  ;;  %6978 = vst [vmem:[#allocation48_spill] sm:$0xff] %v5650_v50  ;;  %v5655_v61 = vand.u32 4294901760, %v285_v34  ;;  %v5660_v39 = vsub.f32 %v291_v13, %v5626_v57 }
 0x128   : > { %1826 = vmatprep.subr.mxu0 %v5517_v8  ;;  %1729 = vmatpush1.msra.mxu1 %v1728_v38  ;;  %v5666_v8 = vsub.f32 %v243_v22, %v5634_v26  ;;  %v5676_v38 = vsub.f32 %v288_v60, %v5642_v62 }
 0x129   : > { %1829 = vmatpush1.msra.mxu0 %v5523_v47  ;;  %1735 = vmatprep.subr.mxu1 %v1734_v7  ;;  %6979 = vst [vmem:[#allocation52_spill] sm:$0xff] %v5655_v61  ;;  %v5668_v47 = vand.u32 4294901760, %v237_v14  ;;  %v228_v7 = vld [vmem:[#allocation5 + $0xd0] sm:$0xff] }
 0x12a   : > { %1832 = vmatprep.subr.mxu0 %v5535_v33  ;;  %1741 = vmatpush1.msra.mxu1 %v1740_v35  ;;  %v5682_v33 = vsub.f32 %v240_v6, %v5650_v50  ;;  %v5702_v35 = vsub.f32 %v285_v34, %v5655_v61  ;;  %v6554_v59 = vand.u32 4294901760, %v5666_v8  ;;  %v6557_v5 = vand.u32 4294901760, %v5676_v38 }
 0x12b   : > { %1835 = vmatpush1.msra.mxu0 %v5540_v58  ;;  %1747 = vmatprep.subr.mxu1 %v1746_v45  ;;  %6980 = vst [vmem:[#allocation54_spill] sm:$0xff] %v5668_v47  ;;  %v5686_v58 = vand.u32 4294901760, %v234_v21  ;;  %v5708_v45 = vsub.f32 %v237_v14, %v5668_v47  ;;  %v5733_v13 = vand.u32 4294901760, %v228_v7 }
 0x12c   : > { %1838 = vmatprep.subr.mxu0 %v5547_v28  ;;  %1753 = vmatpush1.msra.mxu1 %v1752_v3  ;;  %v6558_v22 = vand.u32 4294901760, %v5682_v33 }
 0x12d   : > { %1786 = vmatprep.mubr.f32.mxu1 %v6559_v25  ;;  %1841 = vmatpush1.msra.mxu0 %v5552_v49  ;;  %6982 = vst [vmem:[#allocation58_spill] sm:$0xff] %v5686_v58  ;;  %6985 = vst [vmem:[#allocation64_spill] sm:$0xff] %v5733_v13 }
 0x12e   : > { %1788 = vmatmul.mubr.f32.vlgmr.msra.gmra.mxu1 %v5475_v18  ;;  %1874 = vmatprep.mubr.f32.mxu0 %v6559_v25 }
 0x12f   : > { %1908 = vmatprep.subr.mxu1 %v5470_v29  ;;  %1992 = vmatprep.subr.mxu0 %v1708_v48  ;;  %v6556_v48 = vand.u32 4294901760, %v5629_v1 }
 0x130   : > { %1877 = vmatmul.mubr.f32.vlgmr.msra.gmra.mxu0 %v5501_v9  ;;  %1910 = vmatpush1.msra.mxu1 %v5480_v41  ;;  %v219_v9 = vld [vmem:[#allocation5 + $0x88] sm:$0xff] }
 0x131   : > { %1996 = vmatpush1.msra.mxu0 %v1714_v52  ;;  %1912 = vmatprep.subr.mxu1 %v5485_v40  ;;  %v6555_v52 = vand.u32 4294901760, %v5624_v54  ;;  %v5693_v31 = vsub.f32 %v5629_v1, %v6556_v48 }
 0x132   : > { %2000 = vmatprep.subr.mxu0 %v1720_v53  ;;  %1914 = vmatpush1.msra.mxu1 %v5490_v0  ;;  %v6553_v53 = vand.u32 4294901760, %v5645_v2 }
 0x133   : > { %2004 = vmatpush1.msra.mxu0 %v1726_v43  ;;  %1916 = vmatprep.subr.mxu1 %v5498_v51  ;;  %v6551_v43 = vand.u32 4294901760, %v5640_v20  ;;  %v5698_v28 = vsub.f32 %v5624_v54, %v6555_v52  ;;  %v2370_v6 = vand.u32 4294901760, %v5693_v31  ;;  %v273_v31 = vld [vmem:[#allocation5 + $0x238] sm:$0xff]  ;;  %v5772_v52 = vsub.f32 %v5676_v38, %v6557_v5 }
 0x134   : > { %2008 = vmatprep.subr.mxu0 %v1732_v37  ;;  %1918 = vmatpush1.msra.mxu1 %v5509_v15  ;;  %v5684_v37 = vand.u32 4294901760, %v282_v36  ;;  %v5718_v3 = vsub.f32 %v5645_v2, %v6553_v53  ;;  %v5789_v5 = vand.u32 4294901760, %v273_v31 }
 0x135   : > { %2012 = vmatpush1.msra.mxu0 %v1738_v19  ;;  %1920 = vmatprep.subr.mxu1 %v5514_v17  ;;  %v231_v19 = vld [vmem:[#allocation5 + $0xe8] sm:$0xff]  ;;  %v5723_v49 = vsub.f32 %v5640_v20, %v6551_v43  ;;  %v2258_v34 = vand.u32 4294901760, %v5698_v28  ;;  %v225_v28 = vld [vmem:[#allocation5 + $0xb8] sm:$0xff]  ;;  %v6564_v43 = vand.u32 4294901760, %v5708_v45 }
 0x136   : > { %2016 = vmatprep.subr.mxu0 %v1744_v56  ;;  %6981 = vst [vmem:[#allocation56_spill] sm:$0xff] %v5684_v37  ;;  %1922 = vmatpush1.msra.mxu1 %v5525_v42  ;;  %v6552_v56 = vand.u32 4294901760, %v5660_v39  ;;  %v5737_v60 = vsub.f32 %v282_v36, %v5684_v37  ;;  %v5756_v36 = vand.u32 4294901760, %v276_v4  ;;  %6988 = vst [vmem:[#allocation70_spill] sm:$0xff] %v5789_v5 }
 0x137   : > { %1955 = vmatprep.mubr.f32.mxu1 %v6559_v25  ;;  %2020 = vmatpush1.msra.mxu0 %v1750_v44  ;;  %v5725_v44 = vand.u32 4294901760, %v231_v19  ;;  %v2265_v53 = vand.u32 4294901760, %v5723_v49  ;;  %v222_v49 = vld [vmem:[#allocation5 + $0xa0] sm:$0xff]  ;;  %v5840_v27 = vsub.f32 %v273_v31, %v5789_v5 }
 0x138   : > { %1959 = vmatmul.mubr.f32.vlgmr.msra.gmra.mxu1 %v5532_v63  ;;  %2053 = vmatprep.mubr.f32.mxu0 %v6559_v25  ;;  %v5746_v14 = vsub.f32 %v5660_v39, %v6552_v56  ;;  %6986 = vst [vmem:[#allocation66_spill] sm:$0xff] %v5756_v36  ;;  %v5760_v56 = vsub.f32 %v279_v23, %v5710_v24 }
 0x139   : > { %2086 = vmatprep.subr.mxu1 %v5470_v29  ;;  %6984 = vst [vmem:[#allocation62_spill] sm:$0xff] %v5725_v44  ;;  %3615 = vmatprep.subr.mxu0 %v5609_v10  ;;  %v5731_v29 = vsub.f32 %v234_v21, %v5686_v58  ;;  %v6561_v21 = vand.u32 4294901760, %v5702_v35  ;;  %v5782_v23 = vsub.f32 %v5682_v33, %v6558_v22  ;;  %v5796_v22 = vand.u32 4294901760, %v225_v28 }
 0x13a   : > { %2055 = vmatmul.mubr.f32.vlgmr.msra.gmra.mxu0 %v5475_v18  ;;  %2088 = vmatpush1.msra.mxu1 %v5480_v41  ;;  %v5754_v41 = vsub.f32 %v5666_v8, %v6554_v59  ;;  %v5767_v59 = vsub.f32 %v231_v19, %v5725_v44  ;;  %v5808_v25 = vsub.f32 %v276_v4, %v5756_v36  ;;  %v6993_v19 = vand.u32 4294901760, %v5737_v60 }
 0x13b   : > { %3616 = vmatpush3.msra.mxu0 %v5611_v11  ;;  %2090 = vmatprep.subr.mxu1 %v5485_v40  ;;  %v2377_v40 = vand.u32 4294901760, %v5718_v3  ;;  %v270_v3 = vld [vmem:[#allocation5 + $0x220] sm:$0xff]  ;;  %6989 = vst [vmem:[#allocation72_spill] sm:$0xff] %v5796_v22  ;;  %v2279_v4 = vand.u32 4294901760, %v5782_v23  ;;  %v5835_v23 = vsub.f32 %v225_v28, %v5796_v22  ;;  %v6996_v30 = vand.u32 4294901760, %v5760_v56 }
 0x13c   : > { %3617 = vmatprep.subr.mxu0 %v5615_v16  ;;  %2092 = vmatpush1.msra.mxu1 %v5490_v0  ;;  %v5777_v0 = vsub.f32 %v228_v7, %v5733_v13  ;;  %v5794_v7 = vsub.f32 %v5702_v35, %v6561_v21  ;;  %v2272_v48 = vand.u32 4294901760, %v5754_v41  ;;  %v6990_v21 = vmov 0.0  }
 0x13d   : > { %3618 = vmatpush3.msra.mxu0 %v5617_v46  ;;  %2094 = vmatprep.subr.mxu1 %v5498_v51  ;;  %v2384_v51 = vand.u32 4294901760, %v5746_v14  ;;  %v267_v14 = vld [vmem:[#allocation5 + $0x208] sm:$0xff]  ;;  %v5813_v63 = vand.u32 4294901760, %v270_v3  ;;  %v5815_v41 = vand.u32 4294901760, %v222_v49 }
 0x13e   : > { %3619 = vmatprep.subr.mxu0 %v5626_v57  ;;  %6987 = vst [vmem:[#allocation68_spill] sm:$0xff] %v5777_v0  ;;  %2096 = vmatpush1.msra.mxu1 %v5509_v15  ;;  %v5804_v15 = vsub.f32 %v5708_v45, %v6564_v43  ;;  %v2398_v43 = vand.u32 4294901760, %v5794_v7  ;;  %v5849_v7 = vand.u32 4294901760, %v219_v9 }
 0x13f   : > { %3620 = vmatpush3.msra.mxu0 %v5634_v26  ;;  %2098 = vmatprep.subr.mxu1 %v5514_v17  ;;  %v2391_v17 = vand.u32 4294901760, %v5772_v52  ;;  %6991 = vst [vmem:[#allocation74_spill] sm:$0xff] %v5813_v63  ;;  %6992 = vst [vmem:[#allocation76_spill] sm:$0xff] %v5815_v41  ;;  %v6994_v52 = vand.u32 4294901760, %v5731_v29  ;;  %v5854_v31 = vsub.f32 %v222_v49, %v5815_v41  ;;  %v7000_v49 = vand.u32 4294901760, %v5777_v0 }
 0x140   : > { %3621 = vmatprep.subr.mxu0 %v5642_v62  ;;  %2100 = vmatpush1.msra.mxu1 %v5525_v42  ;;  %v5824_v42 = vsub.f32 %v5737_v60, %v6993_v19  ;;  %v216_v19 = vld [vmem:[#allocation5 + $0x70] sm:$0xff]  ;;  %6997 = vst [vmem:[#allocation88_spill] sm:$0xff] %v5849_v7  ;;  %v7002_v26 = vand.u32 4294901760, %v5840_v27 }
 0x141   : > { %2133 = vmatprep.mubr.f32.mxu1 %v6990_v21  ;;  %3622 = vmatpush3.msra.mxu0 %v5650_v50  ;;  %v5829_v32 = vsub.f32 %v5731_v29, %v6994_v52  ;;  %v264_v21 = vld [vmem:[#allocation5 + $0x1f0] sm:$0xff]  ;;  %v2286_v52 = vand.u32 4294901760, %v5804_v15  ;;  %v213_v50 = vld [vmem:[#allocation5 + $0x58] sm:$0xff]  ;;  %v5874_v62 = vsub.f32 %v5777_v0, %v7000_v49  ;;  %v5888_v0 = vsub.f32 %v219_v9, %v5849_v7 }
 0x142   : > { %2135 = vmatmul.mubr.f32.vlgmr.msra.gmra.mxu1 %v5475_v18  ;;  %3623 = vmatprep.subr.mxu0 %v5655_v61  ;;  %v5837_v18 = vand.u32 4294901760, %v267_v14  ;;  %v261_v61 = vld [vmem:[#allocation5 + $0x1d8] sm:$0xff]  ;;  %v2405_v28 = vand.u32 4294901760, %v5824_v42  ;;  %v258_v42 = vld [vmem:[#allocation5 + $0x1c0] sm:$0xff] }
 0x143   : > { %3650 = vmatprep.subr.mxu1 %v2370_v6  ;;  %3624 = vmatpush3.msra.mxu0 %v5668_v47  ;;  %v5847_v6 = vsub.f32 %v5760_v56, %v6996_v30  ;;  %v5861_v47 = vand.u32 4294901760, %v264_v21  ;;  %v5864_v30 = vsub.f32 %v270_v3, %v5813_v63  ;;  %v5877_v3 = vand.u32 4294901760, %v261_v61 }
 0x144   : > { %6995 = vst [vmem:[#allocation78_spill] sm:$0xff] %v5837_v18  ;;  %3651 = vmatpush3.msra.mxu1 %v2258_v34  ;;  %3625 = vmatprep.subr.mxu0 %v5684_v37  ;;  %v6998_v34 = vand.u32 4294901760, %v5767_v59  ;;  %v5869_v37 = vand.u32 4294901760, %v216_v19 }
 0x145   : > { %3652 = vmatprep.subr.mxu1 %v2377_v40  ;;  %6999 = vst [vmem:[#allocation90_spill] sm:$0xff] %v5864_v30  ;;  %3626 = vmatpush3.msra.mxu0 %v5686_v58  ;;  %v2293_v40 = vand.u32 4294901760, %v5829_v32  ;;  %v5883_v32 = vsub.f32 %v267_v14, %v5837_v18  ;;  %v2412_v49 = vand.u32 4294901760, %v5847_v6  ;;  %v5900_v6 = vsub.f32 %v264_v21, %v5861_v47 }
 0x146   : > { %v5859_v15 = vsub.f32 %v5767_v59, %v6998_v34  ;;  %3653 = vmatpush3.msra.mxu1 %v2265_v53  ;;  %v210_v34 = vld [vmem:[#allocation5 + $0x40] sm:$0xff]  ;;  %3627 = vmatprep.subr.mxu0 %v5710_v24  ;;  %v5880_v53 = vand.u32 4294901760, %v213_v50  ;;  %v5904_v9 = vsub.f32 %v216_v19, %v5869_v37  ;;  %v5907_v58 = vand.u32 4294901760, %v258_v42  ;;  %v252_v19 = vld [vmem:[#allocation5 + $0x190] sm:$0xff] }
 0x147   : > { %3654 = vmatprep.subr.mxu1 %v2384_v51  ;;  %3628 = vmatpush3.msra.mxu0 %v5725_v44  ;;  %v7001_v51 = vand.u32 4294901760, %v5808_v25  ;;  %v5897_v44 = vand.u32 4294901760, %v210_v34  ;;  %v2425_v21 = vsub.f32 %v5840_v27, %v7002_v26 }
 0x148   : > { %3655 = vmatpush3.msra.mxu1 %v2272_v48  ;;  %3629 = vmatprep.subr.mxu0 %v5756_v36  ;;  %v2300_v14 = vand.u32 4294901760, %v5859_v15  ;;  %v255_v48 = vld [vmem:[#allocation5 + $0x1a8] sm:$0xff] }
 0x149   : > { %v2418_v24 = vsub.f32 %v5808_v25, %v7001_v51  ;;  %3656 = vmatprep.subr.mxu1 %v2391_v17  ;;  %3630 = vmatpush3.msra.mxu0 %v5733_v13  ;;  %v2307_v51 = vand.u32 4294901760, %v5874_v62  ;;  %v207_v15 = vld [vmem:[#allocation5 + $0x28] sm:$0xff]  ;;  %v5915_v13 = vsub.f32 %v213_v50, %v5880_v53  ;;  %v5919_v62 = vsub.f32 %v261_v61, %v5877_v3  ;;  %v204_v50 = vld [vmem:[#allocation5 + $0x10] sm:$0xff] }
 0x14a   : > { %3657 = vmatpush3.msra.mxu1 %v2279_v4  ;;  %3631 = vmatprep.subr.mxu0 %v5789_v5  ;;  %v7003_v5 = vand.u32 4294901760, %v5835_v23  ;;  %v5925_v36 = vand.u32 4294901760, %v255_v48  ;;  %v7004_v4 = vand.u32 4294901760, %v5864_v30 }
 0x14b   : > { %3658 = vmatprep.subr.mxu1 %v2398_v43  ;;  %3632 = vmatpush3.msra.mxu0 %v5796_v22  ;;  %v2419_v17 = vand.u32 4294901760, %v2418_v24  ;;  %v5933_v22 = vsub.f32 %v210_v34, %v5897_v44  ;;  %v5935_v24 = vand.u32 4294901760, %v207_v15  ;;  %v2426_v34 = vand.u32 4294901760, %v2425_v21 }
 0x14c   : > { %3659 = vmatpush3.msra.mxu1 %v2286_v52  ;;  %v2313_v43 = vsub.f32 %v5835_v23, %v7003_v5  ;;  %3633 = vmatprep.subr.mxu0 %v5813_v63  ;;  %v2432_v61 = vsub.f32 %v5864_v30, %v7004_v4  ;;  %v7006_v5 = vand.u32 4294901760, %v5854_v31  ;;  %v5942_v63 = vand.u32 4294901760, %v252_v19 }
 0x14d   : > { %3660 = vmatprep.subr.mxu1 %v2405_v28  ;;  %7005 = vst [vmem:[#allocation92_spill] sm:$0xff] %v5933_v22  ;;  %3634 = vmatpush3.msra.mxu0 %v5815_v41  ;;  %v5946_v4 = vsub.f32 %v258_v42, %v5907_v58  ;;  %v7008_v52 = vand.u32 4294901760, %v5883_v32  ;;  %v7009_v28 = vand.u32 4294901760, %v5888_v0  ;;  %v5964_v21 = vsub.f32 %v207_v15, %v5935_v24 }
 0x14e   : > { %3661 = vmatpush3.msra.mxu1 %v2293_v40  ;;  %v2320_v26 = vsub.f32 %v5854_v31, %v7006_v5  ;;  %3635 = vmatprep.subr.mxu0 %v5837_v18  ;;  %v5952_v40 = vand.u32 4294901760, %v204_v50  ;;  %v2314_v5 = vand.u32 4294901760, %v2313_v43  ;;  %v5960_v18 = vsub.f32 %v255_v48, %v5925_v36 }
 0x14f   : > { %7007 = vst [vmem:[#allocation14_spill] sm:$0xff] %v5946_v4  ;;  %3662 = vmatprep.subr.mxu1 %v2412_v49  ;;  %v2439_v41 = vsub.f32 %v5883_v32, %v7008_v52  ;;  %3636 = vmatpush3.msra.mxu0 %v5849_v7  ;;  %v2327_v42 = vsub.f32 %v5888_v0, %v7009_v28  ;;  %v2433_v49 = vand.u32 4294901760, %v2432_v61  ;;  %v7010_v52 = vand.u32 4294901760, %v5900_v6 }
 0x150   : > { %3663 = vmatpush3.msra.mxu1 %v2300_v14  ;;  %3637 = vmatprep.subr.mxu0 %v5861_v47  ;;  %v2321_v43 = vand.u32 4294901760, %v2320_v26  ;;  %v7011_v48 = vand.u32 4294901760, %v5904_v9  ;;  %v5976_v61 = vsub.f32 %v252_v19, %v5942_v63  ;;  %v7013_v14 = vand.u32 4294901760, %v5919_v62 }
 0x151   : > { %3664 = vmatprep.subr.mxu1 %v2419_v17  ;;  %v2446_v30 = vsub.f32 %v5900_v6, %v7010_v52  ;;  %3638 = vmatpush3.msra.mxu0 %v5869_v37  ;;  %v2440_v15 = vand.u32 4294901760, %v2439_v41  ;;  %v5980_v52 = vsub.f32 %v204_v50, %v5952_v40  ;;  %v6604_v19 = vand.u32 4294901760, %v5960_v18 }
 0x152   : > { %3665 = vmatpush3.msra.mxu1 %v2307_v51  ;;  %v2334_v28 = vsub.f32 %v5904_v9, %v7011_v48  ;;  %3639 = vmatprep.subr.mxu0 %v5877_v3  ;;  %v2453_v51 = vsub.f32 %v5919_v62, %v7013_v14  ;;  %v2328_v48 = vand.u32 4294901760, %v2327_v42  ;;  %v7014_v41 = vand.u32 4294901760, %v5915_v13 }
 0x153   : > { %3666 = vmatprep.subr.mxu1 %v2426_v34  ;;  %7012 = vst [vmem:[#allocation35_spill] sm:$0xff] %v5980_v52  ;;  %3640 = vmatpush3.msra.mxu0 %v5880_v53  ;;  %v2447_v34 = vand.u32 4294901760, %v2446_v30  ;;  %v7015_v26 = vand.u32 4294901760, %v5946_v4  ;;  %v6606_v42 = vand.u32 4294901760, %v5976_v61  ;;  %v6605_v17 = vand.u32 4294901760, %v5980_v52 }
 0x154   : > { %3667 = vmatpush3.msra.mxu1 %v2314_v5  ;;  %3641 = vmatprep.subr.mxu0 %v5907_v58  ;;  %v2341_v50 = vsub.f32 %v5915_v13, %v7014_v41  ;;  %v2335_v14 = vand.u32 4294901760, %v2334_v28  ;;  %v2454_v30 = vand.u32 4294901760, %v2453_v51 }
 0x155   : > { %3668 = vmatprep.subr.mxu1 %v2433_v49  ;;  %3642 = vmatpush3.msra.mxu0 %v5897_v44  ;;  %v2460_v5 = vsub.f32 %v5946_v4, %v7015_v26  ;;  %v7016_v49 = vand.u32 4294901760, %v5933_v22 }
 0x156   : > { %3669 = vmatpush3.msra.mxu1 %v2321_v43  ;;  %3643 = vmatprep.subr.mxu0 %v5925_v36  ;;  %v2467_v43 = vsub.f32 %v5960_v18, %v6604_v19  ;;  %v2342_v28 = vand.u32 4294901760, %v2341_v50  ;;  %v7019_v50 = vld [vmem:[#allocation109_spill] sm:$0xff] }
 0x157   : > { %3670 = vmatprep.subr.mxu1 %v2440_v15  ;;  %v2348_v41 = vsub.f32 %v5933_v22, %v7016_v49  ;;  %3644 = vmatpush3.msra.mxu0 %v5935_v24  ;;  %v7017_v15 = vand.u32 4294901760, %v5964_v21  ;;  %v2461_v26 = vand.u32 4294901760, %v2460_v5  ;;  %v7018_v49 = vld [vmem:[#allocation108_spill] sm:$0xff] }
 0x158   : > { %3671 = vmatpush3.msra.mxu1 %v2328_v48  ;;  %3645 = vmatprep.subr.mxu0 %v5942_v63  ;;  %v2474_v48 = vsub.f32 %v5976_v61, %v6606_v42  ;;  %v7035_v42 = vld [vmem:[#allocation74_spill] sm:$0xff] }
 0x159   : > { %3672 = vmatprep.subr.mxu1 %v2447_v34  ;;  %v2355_v51 = vsub.f32 %v5964_v21, %v7017_v15  ;;  %3646 = vmatpush3.msra.mxu0 %v5952_v40  ;;  %v2349_v19 = vand.u32 4294901760, %v2348_v41  ;;  %v2362_v34 = vsub.f32 %v5980_v52, %v6605_v17  ;;  %v2468_v15 = vand.u32 4294901760, %v2467_v43  ;;  %v7021_v41 = vld [vmem:[#allocation33_spill] sm:$0xff]  ;;  %v7022_v43 = vld [vmem:[#allocation68_spill] sm:$0xff] }
 0x15a   : > { %3673 = vmatpush3.msra.mxu1 %v2335_v14  ;;  %2242 = vmatprep.mubr.f32.mxu0 %v7018_v49  ;;  %v2475_v5 = vand.u32 4294901760, %v2474_v48  ;;  %v7026_v48 = vld [vmem:[#allocation90_spill] sm:$0xff]  ;;  %v7027_v49 = vld [vmem:[#allocation56_spill] sm:$0xff] }
 0x15b   : > { %3674 = vmatprep.subr.mxu1 %v2454_v30  ;;  %3685 = vmatprep.subr.mxu0 %v5629_v1  ;;  %v2356_v14 = vand.u32 4294901760, %v2355_v51  ;;  %v2363_v30 = vand.u32 4294901760, %v2362_v34  ;;  %v7024_v51 = vld [vmem:[#allocation52_spill] sm:$0xff]  ;;  %v7028_v34 = vld [vmem:[#allocation58_spill] sm:$0xff] }
 0x15c   : > { %2248 = vmatmul.mubr.f32.vlgmr.msra.gmra.mxu0 %v7019_v50  ;;  %3675 = vmatpush3.msra.mxu1 %v2342_v28  ;;  %v7023_v28 = vld [vmem:[#allocation48_spill] sm:$0xff] }
 0x15d   : > { %3686 = vmatpush3.msra.mxu0 %v5624_v54  ;;  %3676 = vmatprep.subr.mxu1 %v2461_v26  ;;  %v7025_v26 = vld [vmem:[#allocation54_spill] sm:$0xff]  ;;  %v7029_v50 = vld [vmem:[#allocation60_spill] sm:$0xff] }
 0x15e   : > { %3687 = vmatprep.subr.mxu0 %v5645_v2  ;;  %3677 = vmatpush3.msra.mxu1 %v2349_v19  ;;  %v7020_v19 = vld [vmem:[#allocation13_spill] sm:$0xff]  ;;  %v7034_v17 = vld [vmem:[#allocation72_spill] sm:$0xff] }
 0x15f   : > { %3688 = vmatpush3.msra.mxu0 %v5640_v20  ;;  %3678 = vmatprep.subr.mxu1 %v2468_v15  ;;  %v7030_v15 = vld [vmem:[#allocation62_spill] sm:$0xff] }
 0x160   : > { %3689 = vmatprep.subr.mxu0 %v5660_v39  ;;  %3679 = vmatpush3.msra.mxu1 %v2356_v14  ;;  %v7031_v14 = vld [vmem:[#allocation66_spill] sm:$0xff] }
 0x161   : > { %3690 = vmatpush3.msra.mxu0 %v5666_v8  ;;  %3680 = vmatprep.subr.mxu1 %v2475_v5  ;;  %v7032_v5 = vld [vmem:[#allocation64_spill] sm:$0xff] }
 0x162   : > { %3691 = vmatprep.subr.mxu0 %v5676_v38  ;;  %3681 = vmatpush3.msra.mxu1 %v2363_v30  ;;  %v7033_v30 = vld [vmem:[#allocation70_spill] sm:$0xff] }
 0x163   : > { %2478 = vmatprep.mubr.f32.mxu1 %v6971_v12  ;;  %3692 = vmatpush3.msra.mxu0 %v5682_v33  ;;  %v7037_v12 = vld [vmem:[#allocation78_spill] sm:$0xff] }
 0x164   : > { %2480 = vmatmul.mubr.f32.vlgmr.msra.gmra.mxu1 %v6974_v55  ;;  %3693 = vmatprep.subr.mxu0 %v5702_v35  ;;  %v7036_v55 = vld [vmem:[#allocation76_spill] sm:$0xff] }
 0x165   : > { %3720 = vmatprep.subr.mxu1 %v5609_v10  ;;  %3694 = vmatpush3.msra.mxu0 %v5708_v45 }
 0x166   : > { %3721 = vmatpush3.msra.mxu1 %v5611_v11  ;;  %3695 = vmatprep.subr.mxu0 %v5737_v60 }
 0x167   : > { %3722 = vmatprep.subr.mxu1 %v5615_v16  ;;  %3696 = vmatpush3.msra.mxu0 %v5731_v29 }
 0x168   : > { %3723 = vmatpush3.msra.mxu1 %v5617_v46  ;;  %3697 = vmatprep.subr.mxu0 %v5760_v56 }
 0x169   : > { %3724 = vmatprep.subr.mxu1 %v5626_v57  ;;  %3698 = vmatpush3.msra.mxu0 %v5767_v59 }
 0x16a   : > { %3725 = vmatpush3.msra.mxu1 %v7020_v19  ;;  %3699 = vmatprep.subr.mxu0 %v5808_v25 }
 0x16b   : > { %3726 = vmatprep.subr.mxu1 %v7021_v41  ;;  %3700 = vmatpush3.msra.mxu0 %v7022_v43 }
 0x16c   : > { %3727 = vmatpush3.msra.mxu1 %v7023_v28  ;;  %3701 = vmatprep.subr.mxu0 %v5840_v27 }
 0x16d   : > { %3728 = vmatprep.subr.mxu1 %v7024_v51  ;;  %3702 = vmatpush3.msra.mxu0 %v5835_v23 }
 0x16e   : > { %3729 = vmatpush3.msra.mxu1 %v7025_v26  ;;  %3703 = vmatprep.subr.mxu0 %v7026_v48 }
 0x16f   : > { %3730 = vmatprep.subr.mxu1 %v7027_v49  ;;  %3704 = vmatpush3.msra.mxu0 %v5854_v31 }
 0x170   : > { %3731 = vmatpush3.msra.mxu1 %v7028_v34  ;;  %3705 = vmatprep.subr.mxu0 %v5883_v32 }
 0x171   : > { %3732 = vmatprep.subr.mxu1 %v7029_v50  ;;  %3706 = vmatpush3.msra.mxu0 %v5888_v0 }
 0x172   : > { %3733 = vmatpush3.msra.mxu1 %v7030_v15  ;;  %3707 = vmatprep.subr.mxu0 %v5900_v6 }
 0x173   : > { %3734 = vmatprep.subr.mxu1 %v7031_v14  ;;  %3708 = vmatpush3.msra.mxu0 %v5904_v9 }
 0x174   : > { %3735 = vmatpush3.msra.mxu1 %v7032_v5  ;;  %3709 = vmatprep.subr.mxu0 %v5919_v62 }
 0x175   : > { %3736 = vmatprep.subr.mxu1 %v7033_v30  ;;  %3710 = vmatpush3.msra.mxu0 %v5915_v13 }
 0x176   : > { %3737 = vmatpush3.msra.mxu1 %v7034_v17  ;;  %3711 = vmatprep.subr.mxu0 %v5946_v4  ;;  %v7038_v4 = vld [vmem:[#allocation100_spill] sm:$0xff] }
 0x177   : > { %3738 = vmatprep.subr.mxu1 %v7035_v42  ;;  %3712 = vmatpush3.msra.mxu0 %v5933_v22  ;;  %v7039_v22 = vld [vmem:[#allocation102_spill] sm:$0xff] }
 0x178   : > { %3739 = vmatpush3.msra.mxu1 %v7036_v55  ;;  %3713 = vmatprep.subr.mxu0 %v5960_v18 }
 0x179   : > { %3740 = vmatprep.subr.mxu1 %v7037_v12  ;;  %3714 = vmatpush3.msra.mxu0 %v5964_v21  ;;  %v7040_v12 = vand.u32 4294901760, %v5629_v1  ;;  %v7044_v1 = vand.u32 4294901760, %v5660_v39  ;;  %v7050_v39 = vand.u32 4294901760, %v5702_v35  ;;  %v7054_v35 = vand.u32 4294901760, %v5760_v56 }
 0x17a   : > { %3741 = vmatpush3.msra.mxu1 %v5849_v7  ;;  %3715 = vmatprep.subr.mxu0 %v5976_v61  ;;  %v7041_v7 = vand.u32 4294901760, %v5624_v54  ;;  %v7046_v54 = vand.u32 4294901760, %v5676_v38  ;;  %v7052_v38 = vand.u32 4294901760, %v5737_v60  ;;  %v7061_v56 = vand.u32 4294901760, %v5854_v31 }
 0x17b   : > { %3742 = vmatprep.subr.mxu1 %v5861_v47  ;;  %3716 = vmatpush3.msra.mxu0 %v5980_v52  ;;  %v7042_v52 = vand.u32 4294901760, %v5645_v2  ;;  %v7047_v2 = vld [vmem:[#allocation104_spill] sm:$0xff]  ;;  %v7066_v31 = vand.u32 4294901760, %v5919_v62  ;;  %v300_v62 = vld [vmem:[#allocation5 + $0x310] sm:$0xff] }
 0x17c   : > { %2615 = vmatprep.mubr.f32.mxu0 %v7038_v4  ;;  %3743 = vmatpush3.msra.mxu1 %v5869_v37  ;;  %v7043_v4 = vand.u32 4294901760, %v5640_v20  ;;  %v7048_v20 = vand.u32 4294901760, %v5682_v33  ;;  %v7053_v33 = vand.u32 4294901760, %v5731_v29  ;;  %v7064_v29 = vand.u32 4294901760, %v5900_v6 }
 0x17d   : > { %2618 = vmatmul.mubr.f32.vlgmr.msra.gmra.mxu0 %v7039_v22  ;;  %3744 = vmatprep.subr.mxu1 %v5877_v3  ;;  %v7049_v22 = vld [vmem:[#allocation105_spill] sm:$0xff] }
 0x17e   : > { %3755 = vmatprep.subr.mxu0 %v7040_v12  ;;  %3745 = vmatpush3.msra.mxu1 %v5880_v53  ;;  %v7045_v12 = vand.u32 4294901760, %v5666_v8  ;;  %v7051_v8 = vand.u32 4294901760, %v5708_v45  ;;  %v309_v45 = vld [vmem:[#allocation5 + $0x358] sm:$0xff] }
 0x17f   : > { %3756 = vmatpush3.msra.mxu0 %v7041_v7  ;;  %3746 = vmatprep.subr.mxu1 %v5907_v58  ;;  %v6151_v60 = vand.u32 4294901760, %v309_v45  ;;  %v7065_v7 = vand.u32 4294901760, %v5904_v9 }
 0x180   : > { %3757 = vmatprep.subr.mxu0 %v7042_v52  ;;  %3747 = vmatpush3.msra.mxu1 %v5897_v44  ;;  %v7068_v52 = vld [vmem:[#allocation14_spill] sm:$0xff] }
 0x181   : > { %3758 = vmatpush3.msra.mxu0 %v7043_v4  ;;  %3748 = vmatprep.subr.mxu1 %v5925_v36  ;;  %v6168_v9 = vsub.f32 %v309_v45, %v6151_v60  ;;  %v7083_v4 = vld [vmem:[#allocation11_spill] sm:$0xff] }
 0x182   : > { %3759 = vmatprep.subr.mxu0 %v7044_v1  ;;  %3749 = vmatpush3.msra.mxu1 %v5935_v24  ;;  %v7084_v1 = vld [vmem:[#allocation29_spill] sm:$0xff] }
 0x183   : > { %3760 = vmatpush3.msra.mxu0 %v7045_v12  ;;  %3750 = vmatprep.subr.mxu1 %v5942_v63  ;;  %v7085_v12 = vld [vmem:[#allocation12_spill] sm:$0xff] }
 0x184   : > { %3761 = vmatprep.subr.mxu0 %v7046_v54  ;;  %3751 = vmatpush3.msra.mxu1 %v5952_v40  ;;  %v454_v54 = vpop.f32.mrf.mxu0 }
 0x185   : > { %2722 = vmatprep.mubr.f32.mxu1 %v7047_v2  ;;  %3762 = vmatpush3.msra.mxu0 %v7048_v20  ;;  %v847_v2 = vpop.f32.mrf.mxu1 }
 0x186   : > { %2726 = vmatmul.mubr.f32.vlgmr.msra.gmra.mxu1 %v7049_v22  ;;  %3763 = vmatprep.subr.mxu0 %v7050_v39  ;;  %v456_v20 = vpop.f32.mrf.mxu0 }
 0x187   : > { %3790 = vmatprep.subr.mxu1 %v5609_v10  ;;  %3764 = vmatpush3.msra.mxu0 %v7051_v8  ;;  %v7055_v10 = vand.u32 4294901760, %v5767_v59  ;;  %v7063_v59 = vand.u32 4294901760, %v5888_v0  ;;  %v303_v0 = vld [vmem:[#allocation5 + $0x328] sm:$0xff]  ;;  %v849_v22 = vpop.f32.mrf.mxu1 }
 0x188   : > { %3791 = vmatpush3.msra.mxu1 %v5611_v11  ;;  %3765 = vmatprep.subr.mxu0 %v7052_v38  ;;  %v7056_v11 = vand.u32 4294901760, %v5808_v25  ;;  %v7060_v25 = vand.u32 4294901760, %v7026_v48  ;;  %v6184_v48 = vand.u32 4294901760, %v300_v62 }
 0x189   : > { %3792 = vmatprep.subr.mxu1 %v5615_v16  ;;  %3766 = vmatpush3.msra.mxu0 %v7053_v33  ;;  %v7057_v16 = vand.u32 4294901760, %v7022_v43  ;;  %v848_v33 = vadd.f32 %v847_v2, %v454_v54 }
 0x18a   : > { %3793 = vmatpush3.msra.mxu1 %v5617_v46  ;;  %3767 = vmatprep.subr.mxu0 %v7054_v35  ;;  %v7058_v46 = vand.u32 4294901760, %v5840_v27  ;;  %v7062_v27 = vand.u32 4294901760, %v5883_v32  ;;  %v7067_v32 = vand.u32 4294901760, %v5915_v13  ;;  %v6173_v13 = vand.u32 4294901760, %v303_v0 }
 0x18b   : > { %3794 = vmatprep.subr.mxu1 %v5626_v57  ;;  %3768 = vmatpush3.msra.mxu0 %v7055_v10  ;;  %v7059_v57 = vand.u32 4294901760, %v5835_v23  ;;  %v306_v23 = vld [vmem:[#allocation5 + $0x340] sm:$0xff] }
 0x18c   : > { %3795 = vmatpush3.msra.mxu1 %v7020_v19  ;;  %3769 = vmatprep.subr.mxu0 %v7056_v11  ;;  %v6162_v6 = vand.u32 4294901760, %v306_v23  ;;  %v7069_v19 = vand.u32 4294901760, %v7068_v52  ;;  %v850_v11 = vadd.f32 %v849_v22, %v456_v20 }
 0x18d   : > { %3796 = vmatprep.subr.mxu1 %v7021_v41  ;;  %3770 = vmatpush3.msra.mxu0 %v7057_v16  ;;  %v7070_v41 = vld [vmem:[#allocation92_spill] sm:$0xff] }
 0x18e   : > { %3797 = vmatpush3.msra.mxu1 %v7023_v28  ;;  %3771 = vmatprep.subr.mxu0 %v7058_v46  ;;  %v7071_v43 = vand.u32 4294901760, %v7070_v41  ;;  %v7073_v28 = vld [vmem:[#allocation78_spill] sm:$0xff] }
 0x18f   : > { %3798 = vmatprep.subr.mxu1 %v7024_v51  ;;  %3772 = vmatpush3.msra.mxu0 %v7059_v57  ;;  %v7074_v51 = vand.u32 4294901760, %v5964_v21  ;;  %v6194_v21 = vsub.f32 %v303_v0, %v6173_v13 }
 0x190   : > { %3799 = vmatpush3.msra.mxu1 %v7025_v26  ;;  %3773 = vmatprep.subr.mxu0 %v7060_v25  ;;  %v6182_v26 = vsub.f32 %v306_v23, %v6162_v6 }
 0x191   : > { %3800 = vmatprep.subr.mxu1 %v7027_v49  ;;  %3774 = vmatpush3.msra.mxu0 %v7061_v56  ;;  %v7076_v49 = vand.u32 4294901760, %v5976_v61  ;;  %v7081_v61 = vmov 0.0  }
 0x192   : > { %3801 = vmatpush3.msra.mxu1 %v7028_v34  ;;  %3775 = vmatprep.subr.mxu0 %v7062_v27 }
 0x193   : > { %3802 = vmatprep.subr.mxu1 %v7029_v50  ;;  %3776 = vmatpush3.msra.mxu0 %v7063_v59  ;;  %v7079_v50 = vld [vmem:[#allocation97_spill] sm:$0xff] }
 0x194   : > { %3803 = vmatpush3.msra.mxu1 %v7030_v15  ;;  %3777 = vmatprep.subr.mxu0 %v7064_v29  ;;  %v7080_v15 = vld [vmem:[#allocation99_spill] sm:$0xff] }
 0x195   : > { %3804 = vmatprep.subr.mxu1 %v7031_v14  ;;  %3778 = vmatpush3.msra.mxu0 %v7065_v7  ;;  %v3116_v14 = vand.u32 4294901760, %v6182_v26 }
 0x196   : > { %3805 = vmatpush3.msra.mxu1 %v7032_v5  ;;  %3779 = vmatprep.subr.mxu0 %v7066_v31 }
 0x197   : > { %3806 = vmatprep.subr.mxu1 %v7033_v30  ;;  %3780 = vmatpush3.msra.mxu0 %v7067_v32 }
 0x198   : > { %3807 = vmatpush3.msra.mxu1 %v7034_v17  ;;  %3781 = vmatprep.subr.mxu0 %v7069_v19  ;;  %v7072_v17 = vand.u32 4294901760, %v5960_v18  ;;  %v3109_v18 = vand.u32 4294901760, %v6168_v9 }
 0x199   : > { %3808 = vmatprep.subr.mxu1 %v7035_v42  ;;  %3782 = vmatpush3.msra.mxu0 %v7071_v43  ;;  %v7075_v42 = vld [vmem:[#allocation88_spill] sm:$0xff]  ;;  %v1050_v39 = vpop.f32.mrf.mxu0 }
 0x19a   : > { %3809 = vmatpush3.msra.mxu1 %v7036_v55  ;;  %3783 = vmatprep.subr.mxu0 %v7072_v17  ;;  %v7077_v55 = vld [vmem:[#allocation35_spill] sm:$0xff]  ;;  %v3110_v5 = vsub.f32 %v6168_v9, %v3109_v18  ;;  %v1051_v16 = vadd.f32 %v1050_v39, %v848_v33 }
 0x19b   : > { %3810 = vmatprep.subr.mxu1 %v7073_v28  ;;  %3784 = vmatpush3.msra.mxu0 %v7074_v51  ;;  %v7078_v34 = vand.u32 4294901760, %v7077_v55  ;;  %v1052_v38 = vpop.f32.mrf.mxu0 }
 0x19c   : > { %3811 = vmatpush3.msra.mxu1 %v7075_v42  ;;  %3785 = vmatprep.subr.mxu0 %v7076_v49  ;;  %v1053_v57 = vadd.f32 %v1052_v38, %v850_v11 }
 0x19d   : > { %3812 = vmatprep.subr.mxu1 %v5861_v47  ;;  %3786 = vmatpush3.msra.mxu0 %v7078_v34  ;;  %v6201_v47 = vsub.f32 %v300_v62, %v6184_v48 }
 0x19e   : > { %2892 = vmatprep.mubr.f32.mxu0 %v7079_v50  ;;  %3813 = vmatpush3.msra.mxu1 %v5869_v37  ;;  %v3123_v37 = vand.u32 4294901760, %v6194_v21 }
 0x19f   : > { %2894 = vmatmul.mubr.f32.vlgmr.msra.gmra.mxu0 %v7080_v15  ;;  %3814 = vmatprep.subr.mxu1 %v5877_v3  ;;  %v3117_v3 = vsub.f32 %v6182_v26, %v3116_v14 }
 0x1a0   : > { %3855 = vmatprep.subr.mxu0 %v7081_v61  ;;  %3815 = vmatpush3.msra.mxu1 %v5880_v53  ;;  %v3130_v53 = vand.u32 4294901760, %v6201_v47 }
 0x1a1   : > { %3856 = vmatpush3.msra.mxu0 %v6151_v60  ;;  %3816 = vmatprep.subr.mxu1 %v5907_v58  ;;  %v3111_v58 = vand.u32 4294901760, %v3110_v5 }
 0x1a2   : > { %3857 = vmatprep.subr.mxu0 %v7081_v61  ;;  %3817 = vmatpush3.msra.mxu1 %v5897_v44  ;;  %v3124_v44 = vsub.f32 %v6194_v21, %v3123_v37  ;;  %v1191_v8 = vpop.f32.mrf.mxu1 }
 0x1a3   : > { %3858 = vmatpush3.msra.mxu0 %v6162_v6  ;;  %3818 = vmatprep.subr.mxu1 %v5925_v36  ;;  %v3118_v36 = vand.u32 4294901760, %v3117_v3  ;;  %v1192_v25 = vadd.f32 %v1191_v8, %v1051_v16 }
 0x1a4   : > { %3859 = vmatprep.subr.mxu0 %v7081_v61  ;;  %3819 = vmatpush3.msra.mxu1 %v5935_v24  ;;  %v3131_v24 = vsub.f32 %v6201_v47, %v3130_v53  ;;  %v1193_v35 = vpop.f32.mrf.mxu1 }
 0x1a5   : > { %2996 = vmatprep.mubr.f32.mxu1 %v7079_v50  ;;  %3820 = vmatprep.subr.mxu1 %v5942_v63  ;;  %v3125_v63 = vand.u32 4294901760, %v3124_v44  ;;  %v1194_v45 = vadd.f32 %v1193_v35, %v1053_v57 }
 0x1a6   : > { %3860 = vmatpush3.msra.mxu0 %v6173_v13  ;;  %3821 = vmatpush3.msra.mxu1 %v5952_v40  ;;  %v7082_v40 = vld [vmem:[#allocation31_spill] sm:$0xff]  ;;  %v3132_v30 = vand.u32 4294901760, %v3131_v24 }
 0x1a7   : > { %3861 = vmatprep.subr.mxu0 %v7081_v61  ;;  %2998 = vmatmul.mubr.f32.vlgmr.msra.gmra.mxu1 %v7080_v15 }
 0x1a8   : > { %3866 = vmatprep.subr.mxu1 %v7081_v61  ;;  %3862 = vmatpush3.msra.mxu0 %v6184_v48 }
 0x1a9   : > { %3867 = vmatpush3.msra.mxu1 %v3111_v58  ;;  %3863 = vmatprep.mubr.msk.f32.mxu0 %vm4147_vm1, %v7081_v61 }
 0x1aa   : > { %3868 = vmatprep.subr.mxu1 %v7081_v61  ;;  %3877 = vmatprep.subr.mxu0 %v7081_v61 }
 0x1ab   : > { %3864 = vmatmul.mubr.f32.vlgmr.msra.gmra.mxu0 %v7082_v40  ;;  %3869 = vmatpush3.msra.mxu1 %v3118_v36 }
 0x1ac   : > { %3878 = vmatpush3.msra.mxu0 %v6168_v9  ;;  %3870 = vmatprep.subr.mxu1 %v7081_v61 }
 0x1ad   : > { %3879 = vmatprep.subr.mxu0 %v7081_v61  ;;  %3871 = vmatpush3.msra.mxu1 %v3125_v63 }
 0x1ae   : > { %3880 = vmatpush3.msra.mxu0 %v6182_v26  ;;  %3872 = vmatprep.subr.mxu1 %v7081_v61 }
 0x1af   : > { %3881 = vmatprep.subr.mxu0 %v7081_v61  ;;  %3873 = vmatpush3.msra.mxu1 %v3132_v30 }
 0x1b0   : > { %3874 = vmatprep.mubr.msk.f32.mxu1 %vm4147_vm1, %v7081_v61  ;;  %3882 = vmatpush3.msra.mxu0 %v6194_v21 }
 0x1b1   : > { %3875 = vmatmul.mubr.f32.vlgmr.msra.gmra.mxu1 %v7083_v4  ;;  %3883 = vmatprep.subr.mxu0 %v7081_v61 }
 0x1b2   : > { %3888 = vmatprep.subr.mxu1 %v7081_v61  ;;  %3884 = vmatpush3.msra.mxu0 %v6201_v47 }
 0x1b3   : > { %3885 = vmatprep.mubr.msk.f32.mxu0 %vm4147_vm1, %v7081_v61  ;;  %3889 = vmatpush3.msra.mxu1 %v6151_v60 }
 0x1b4   : > { %3886 = vmatmul.mubr.f32.vlgmr.msra.gmra.mxu0 %v7084_v1  ;;  %3890 = vmatprep.subr.mxu1 %v7081_v61 }
 0x1b5   : > { %3899 = vmatprep.subr.mxu0 %v7081_v61  ;;  %3891 = vmatpush3.msra.mxu1 %v6162_v6 }
 0x1b6   : > { %3900 = vmatpush3.msra.mxu0 %v3109_v18  ;;  %3892 = vmatprep.subr.mxu1 %v7081_v61 }
 0x1b7   : > { %3901 = vmatprep.subr.mxu0 %v7081_v61  ;;  %3893 = vmatpush3.msra.mxu1 %v6173_v13 }
 0x1b8   : > { %3902 = vmatpush3.msra.mxu0 %v3116_v14  ;;  %3894 = vmatprep.subr.mxu1 %v7081_v61 }
 0x1b9   : > { %3903 = vmatprep.subr.mxu0 %v7081_v61  ;;  %3895 = vmatpush3.msra.mxu1 %v6184_v48 }
 0x1ba   : > { %3896 = vmatprep.mubr.msk.f32.mxu1 %vm4147_vm1, %v7081_v61  ;;  %3904 = vmatpush3.msra.mxu0 %v3123_v37 }
 0x1bb   : > { %3897 = vmatmul.mubr.f32.vlgmr.msra.gmra.mxu1 %v7085_v12  ;;  %3905 = vmatprep.subr.mxu0 %v7081_v61 }
 0x1bc   : > { %3910 = vmatprep.subr.mxu1 %v7081_v61  ;;  %3906 = vmatpush3.msra.mxu0 %v3130_v53 }
 0x1bd   : > { %3907 = vmatprep.mubr.msk.f32.mxu0 %vm4147_vm1, %v7081_v61  ;;  %3911 = vmatpush3.msra.mxu1 %v6151_v60 }
 0x1be   : > { %3908 = vmatmul.mubr.f32.vlgmr.msra.gmra.mxu0 %v7083_v4  ;;  %3912 = vmatprep.subr.mxu1 %v7081_v61 }
 0x1bf   : > { %3918 = vmatprep.mubr.msk.f32.mxu1 %vm4147_vm1, %v7081_v61  ;;  %3913 = vmatpush3.msra.mxu1 %v6162_v6 }
 0x1c0   : > { %3914 = vmatprep.subr.mxu1 %v7081_v61 }
 0x1c1   : > { %3915 = vmatpush3.msra.mxu1 %v6173_v13 }
 0x1c2   : > { %3916 = vmatprep.subr.mxu1 %v7081_v61 }
 0x1c3   : > { %3917 = vmatpush3.msra.mxu1 %v6184_v48 }
 0x1c4   : > { %3919 = vmatmul.mubr.f32.vlgmr.msra.gmra.mxu1 %v7083_v4 }
 0x1db   : > { %v1456_v10 = vpop.f32.mrf.mxu0 }
 0x1dc   : > { %v1457_v27 = vadd.f32 %v1456_v10, %v1192_v25 }
 0x1dd   : > { %v1458_v56 = vpop.f32.mrf.mxu0 }
 0x1de   : > { %v1459_v60 = vadd.f32 %v1458_v56, %v1194_v45 }
 0x1e4   : > { %v1593_v46 = vpop.f32.mrf.mxu1 }
 0x1e5   : > { %v1594_v23 = vadd.f32 %v1593_v46, %v1457_v27 }
 0x1e6   : > { %v1595_v59 = vpop.f32.mrf.mxu1  ;;  %v1677_v29 = vpop.f32.mrf.mxu0 }
 0x1e7   : > { %v1596_v31 = vadd.f32 %v1595_v59, %v1459_v60  ;;  %v1678_v32 = vadd.f32 %v1677_v29, %v1594_v23 }
 0x1e8   : > { %v1679_v0 = vpop.f32.mrf.mxu0 }
 0x1e9   : > { %v1680_v19 = vadd.f32 %v1679_v0, %v1596_v31 }
 0x1ee   : > { %v1789_v7 = vpop.f32.mrf.mxu1 }
 0x1ef   : > { %v1790_v9 = vadd.f32 %v1789_v7, %v1678_v32 }
 0x1f0   : > { %v1791_v6 = vpop.f32.mrf.mxu1  ;;  %v1878_v52 = vpop.f32.mrf.mxu0 }
 0x1f1   : > { %v1792_v41 = vadd.f32 %v1791_v6, %v1680_v19  ;;  %v1879_v13 = vadd.f32 %v1878_v52, %v1790_v9 }
 0x1f2   : > { %v1880_v43 = vpop.f32.mrf.mxu0 }
 0x1f3   : > { %v1881_v51 = vadd.f32 %v1880_v43, %v1792_v41 }
 0x1f8   : > { %v1960_v62 = vpop.f32.mrf.mxu1 }
 0x1f9   : > { %v1961_v42 = vadd.f32 %v1960_v62, %v1879_v13 }
 0x1fa   : > { %v1962_v17 = vpop.f32.mrf.mxu1  ;;  %v2056_v28 = vpop.f32.mrf.mxu0 }
 0x1fb   : > { %v1963_v26 = vadd.f32 %v1962_v17, %v1881_v51  ;;  %v2057_v49 = vadd.f32 %v2056_v28, %v1961_v42 }
 0x1fc   : > { %v2058_v48 = vpop.f32.mrf.mxu0 }
 0x1fd   : > { %v2059_v55 = vadd.f32 %v2058_v48, %v1963_v26 }
 0x202   : > { %v2136_v18 = vpop.f32.mrf.mxu1 }
 0x203   : > { %v2137_v34 = vadd.f32 %v2136_v18, %v2057_v49 }
 0x204   : > { %v2138_v50 = vpop.f32.mrf.mxu1 }
 0x205   : > { %v3488_v21 = vmul.f32 0.04, %v2137_v34  ;;  %v2139_v15 = vadd.f32 %v2138_v50, %v2059_v55 }
 0x207   : > { %3491 = vst [vmem:[%s6282_s17] sm:$0xff] %v3488_v21  ;;  %v3489_v61 = vmul.f32 0.04, %v2139_v15 }
 0x209   : > { %3492 = vst [vmem:[%s6282_s17 + $0x8] sm:$0xff] %v3489_v61 }
 0x21c   : > { %v3647_v47 = vpop.f32.mrf.mxu0 }
 0x21e   : > { %v3648_v5 = vpop.f32.mrf.mxu0 }
 0x21f   : > { %v3649_v63 = vadd.f32 %v3648_v5, %v3647_v47 }
 0x224   : > { %v3682_v14 = vpop.f32.mrf.mxu1 }
 0x226   : > { %v3683_v3 = vpop.f32.mrf.mxu1 }
 0x227   : > { %v3684_v36 = vadd.f32 %v3683_v3, %v3682_v14 }
 0x229   : > { %v2482_v1 = vadd.f32 %v3684_v36, %v3649_v63 }
 0x23d   : > { %v3717_v37 = vpop.f32.mrf.mxu0 }
 0x23f   : > { %v3718_v58 = vpop.f32.mrf.mxu0 }
 0x240   : > { %v3719_v40 = vadd.f32 %v3718_v58, %v3717_v37 }
 0x242   : > { %v2620_v20 = vadd.f32 %v3719_v40, %v2482_v1 }
 0x246   : > { %v3752_v53 = vpop.f32.mrf.mxu1 }
 0x248   : > { %v3753_v24 = vpop.f32.mrf.mxu1 }
 0x249   : > { %v3754_v12 = vadd.f32 %v3753_v24, %v3752_v53 }
 0x24b   : > { %v2728_v8 = vadd.f32 %v3754_v12, %v2620_v20 }
 0x25f   : > { %v3787_v44 = vpop.f32.mrf.mxu0 }
 0x261   : > { %v3788_v4 = vpop.f32.mrf.mxu0 }
 0x262   : > { %v3789_v22 = vadd.f32 %v3788_v4, %v3787_v44 }
 0x264   : > { %v2896_v33 = vadd.f32 %v3789_v22, %v2728_v8 }
 0x267   : > { %v3822_v30 = vpop.f32.mrf.mxu1 }
 0x269   : > { %v3823_v54 = vpop.f32.mrf.mxu1 }
 0x26a   : > { %v3824_v38 = vadd.f32 %v3823_v54, %v3822_v30 }
 0x26b   : > { %v3078_v2 = vpop.f32.mrf.mxu0 }
 0x26c   : > { %v3000_v10 = vadd.f32 %v3824_v38, %v2896_v33 }
 0x26d   : > { %v3865_v39 = vpop.f32.mrf.mxu0 }
 0x26e   : > { %v3079_v46 = vadd.f32 %v3078_v2, %v3000_v10 }
 0x271   : > { %v3169_v35 = vpop.f32.mrf.mxu1 }
 0x272   : > { %v3170_v25 = vadd.f32 %v3169_v35, %v3079_v46 }
 0x273   : > { %v3876_v11 = vpop.f32.mrf.mxu1 }
 0x274   : > { %v3249_v16 = vpop.f32.mrf.mxu0 }
 0x275   : > { %v3250_v27 = vadd.f32 %v3249_v16, %v3170_v25 }
 0x276   : > { %v3887_v57 = vpop.f32.mrf.mxu0 }
 0x27b   : > { %v3326_v56 = vpop.f32.mrf.mxu1 }
 0x27c   : > { %v3327_v29 = vadd.f32 %v3326_v56, %v3250_v27 }
 0x27d   : > { %v3898_v45 = vpop.f32.mrf.mxu1 }
 0x27e   : > { %v3409_v59 = vpop.f32.mrf.mxu0 }
 0x27f   : > { %v3410_v23 = vadd.f32 %v3409_v59, %v3327_v29 }
 0x280   : > { %v3909_v60 = vpop.f32.mrf.mxu0 }
 0x284   : > { %v3484_v7 = vpop.f32.mrf.mxu1 }
 0x285   : > { %v3485_v31 = vadd.f32 %v3484_v7, %v3410_v23 }
 0x286   : > { %v3920_v0 = vpop.f32.mrf.mxu1 }
 0x287   : > { %v3490_v32 = vmul.f32 0.04, %v3485_v31 }
 0x289   : > { %3493 = vst.msk [vmem:[%s6282_s17 + $0x10] sm:$0xff] %vm310_vm0, %v3490_v32 }
 0x28a   : > { %4069 = shalt.err (!%p4066_p6)
}
 0x28b   : > { %s4070_s28 = scalar_lea.hbm %s3509_s23, 384  ;;  %s4074_s3 = scalar_lea.hbm %s6331_s2, 768 }
 0x28c   : > { %p4071_p4 = scmp.ne.s32.totalorder %s3509_s23, %s4070_s28  ;;  %p4075_p0 = scmp.lt.s32.totalorder %s3509_s23, %s6331_s2 }
 0x28d   : > { %p4076_p3 = scmp.lt.s32.totalorder %s4074_s3, %s4070_s28 }
 0x28e   : > { %p4072_p9 = pnand %p4071_p4, %p4247_p13 }
 0x28f   : > { %p4077_p1 = por %p4076_p3, %p4075_p0 }
 0x290   : > { %p4073_p12 = pneg %p4072_p9 }
 0x292   : > { %p4078_p8 = pnand %p4077_p1, %p4073_p12 }
 0x294   : > { %4081 = shalt.err (!%p4078_p8)
}
 0x295   : > { %3931 = dma.vmem_to_hbm [thread:$0]  (%p4247_p13), %s3512_s21, 384, %s3509_s23, %s3495_s24  }
 0x296 PF: > { %s3523_s7 = sand.u32 1, %s4120_s9   ;;  %p7086_p11 = scmp.ne.s32.totalorder %s6616_s20, 0 }
 0x297   : > { %s3524_s15 = scalar_lea.sflag [#allocation4], %s3523_s7 }
 0x298   : > { %p3942_p2 = pnand %p3608_p10, %p7086_p11 }
 0x29a   : > { %p3943_p5 = pneg %p3942_p2 }
 0x29c   : > { %4115 = dma.done.wait (%p3943_p5), %s3524_s15, 384  }
 0x29d   : > { %4117 = vsyncadd (%p3943_p5), %s3524_s15, 4294966912  ;;  %s19_s14 = sadd.s32 1, %s4140_s14   ;;  %s7087_s9 = smov %s4124_s10 }
 0x29e   : > { %p16_p7 = scmp.ge.s32.totalorder %s19_s14, 4   ;;  %s7088_s10 = smov %s4128_s11 }
 0x29f   : > { %s7089_s11 = smov %s4256_s8  ;;  %s7090_s12 = smov %s4136_s13 }
 0x2a0   : > { %s7091_s13 = smov %s7093_s25  ;;  %18 = sbr.rel (!%p16_p7) target bundleno = 7 (0x7), region = 78 }
 0x2a5   :  { %3529 = vsyncpa [#allocation3], 1 }
 0x2a6   :  { %3531 = vsyncpa [#allocation3 + $0x1], 1 }
 0x2a7   :  { %3532 = vsyncpa [#allocation6], 1 }
 0x2a8   :  { %3533 = vsyncpa [#allocation4], 1 }
 0x2a9   :  { %3535 = vsyncpa [#allocation4 + $0x1], 1 }

</bundles_post_ra>
